<compile_context>
chip_gen: v7x
topology: tpu7x:2x2x1
jax: 0.10.0
libtpu: 0.0.40
codegen_flags: <defaults>
</compile_context>

<pallas_src>
import functools

import jax
import jax.numpy as jnp
from jax.experimental import pallas as pl
from jax.experimental.pallas import tpu as pltpu


def _round_up(n, m):
    return ((n + m - 1) // m) * m


def _cdiv(a, b):
    return (a + b - 1) // b


def _ffn_kernel(x_ref, w1_ref, w3_ref, w2_ref, o_ref, acc_ref):
    """One (row-tile, hidden-tile) grid step of SwiGLU.

    x_ref : (tm, dim)       token tile (resident across the hidden axis)
    w1_ref: (th, dim)       w1 rows for this hidden tile (PyTorch layout)
    w3_ref: (th, dim)       w3 rows for this hidden tile
    w2_ref: (dim, th)       w2 columns for this hidden tile
    o_ref : (tm, dim)       output tile (resident across the hidden axis)
    acc_ref: (tm, dim) f32  VMEM accumulator scratch
    """
    @pl.when(pl.program_id(1) == 0)
    def _():
        acc_ref[...] = jnp.zeros_like(acc_ref)

    x = x_ref[...]
    # Contract the shared feature axis of both operands (trans_b matmul) so
    # weights stream in their native (out, in) layout — no HBM relayout.
    dn = (((1,), (1,)), ((), ()))
    h1 = jax.lax.dot_general(x, w1_ref[...], dn,
                             preferred_element_type=jnp.float32)     # (tm, th)
    h3 = jax.lax.dot_general(x, w3_ref[...], dn,
                             preferred_element_type=jnp.float32)     # (tm, th)
    gated = (h1 * jax.nn.sigmoid(h1)) * h3                            # SiLU * w3

    acc_ref[...] += jax.lax.dot_general(
        gated.astype(w2_ref.dtype), w2_ref[...], dn,
        preferred_element_type=jnp.float32)                           # (tm, dim)

    @pl.when(pl.program_id(1) == pl.num_programs(1) - 1)
    def _():
        o_ref[...] = acc_ref[...].astype(o_ref.dtype)


def _chip_defaults():
    """(tm, th, vmem_limit_bytes) per TPU generation."""
    try:
        kind = jax.devices()[0].device_kind.lower()
    except Exception:
        kind = ""
    if "v7" in kind:                       # 64 MiB physical VMEM per core
        return 512, 256, 48 * 1024 * 1024
    if "v6" in kind:                       # 128 MiB VMEM, needs high AI
        return 1024, 256, 96 * 1024 * 1024
    if "v5" in kind:                       # v5e: near roofline knee already
        return 512, 256, 64 * 1024 * 1024
    return 512, 256, 48 * 1024 * 1024      # conservative default


def _vmem_estimate(tm, th, dim, itemsize):
    dbl = 2                                           # double-buffered stages
    x_bytes = tm * dim * itemsize * dbl
    w_bytes = 3 * th * dim * itemsize * dbl           # w1, w3, w2 tiles
    o_bytes = tm * dim * itemsize * dbl
    acc_bytes = tm * dim * 4
    interm_bytes = 3 * tm * th * 4                    # h1, h3, gated (f32)
    return x_bytes + w_bytes + o_bytes + acc_bytes + interm_bytes


def _pick_th(hidden, th_req):
    for cand in (th_req, 512, 256, 128):
        if cand is not None and cand <= hidden and hidden % cand == 0:
            return cand
    return hidden


@functools.partial(jax.jit, static_argnames=("tm", "th", "compute_dtype"))
def ffn_pallas(x, w1, w2, w3, *, tm=None, th=None, compute_dtype=jnp.bfloat16):
    """SwiGLU FFN: y = w2( silu(x @ w1.T) * (x @ w3.T) ).

    x : [B, S, dim]
    w1, w3 : [hidden, dim]   (nn.Linear layout: out_features x in_features)
    w2 : [dim, hidden]
    """
    B, S, dim = x.shape
    hidden, dim_w = w1.shape
    assert dim_w == dim and w2.shape == (dim, hidden) and w3.shape == (hidden, dim)
    out_dtype = x.dtype

    tm_req, th_req, vmem_limit = _chip_defaults()
    if tm is not None:
        tm_req = tm
    if th is not None:
        th_req = th

    # Operands in the native MXU dtype (bf16 by default); f32 accumulation.
    M = B * S
    x2d = x.reshape(M, dim).astype(compute_dtype)
    w1c = w1.astype(compute_dtype)
    w2c = w2.astype(compute_dtype)
    w3c = w3.astype(compute_dtype)
    itemsize = jnp.dtype(compute_dtype).itemsize

    # --- tile selection --------------------------------------------------
    th_eff = _pick_th(hidden, th_req)
    n_m = max(1, _cdiv(M, tm_req))
    tm_eff = min(_round_up(_cdiv(M, n_m), 8), _round_up(M, 8))
    # Shrink until the pipelined working set fits the per-chip VMEM budget
    # (with headroom for Mosaic internal scratch).
    while (_vmem_estimate(tm_eff, th_eff, dim, itemsize) > 0.85 * vmem_limit
           and (th_eff > 128 or tm_eff > 128)):
        if th_eff > 128 and th_eff % 2 == 0 and hidden % (th_eff // 2) == 0:
            th_eff //= 2
        elif tm_eff > 128:
            tm_eff = _round_up(tm_eff // 2, 8)
        else:
            break
    n_h = hidden // th_eff
    n_m = _cdiv(M, tm_eff)
    M_pad = n_m * tm_eff
    if M_pad != M:
        x2d = jnp.pad(x2d, ((0, M_pad - M), (0, 0)))

    cost = pl.CostEstimate(
        flops=6 * M_pad * dim * hidden,
        transcendentals=M_pad * hidden,
        bytes_accessed=3 * dim * hidden * itemsize * n_m      # weights per row tile
        + 2 * M_pad * dim * itemsize,                          # x in, y out
    )

    out2d = pl.pallas_call(
        _ffn_kernel,
        out_shape=jax.ShapeDtypeStruct((M_pad, dim), out_dtype),
        grid_spec=pltpu.PrefetchScalarGridSpec(
            num_scalar_prefetch=0,
            grid=(n_m, n_h),
            in_specs=[
                pl.BlockSpec((tm_eff, dim), lambda i, h: (i, 0)),   # x
                pl.BlockSpec((th_eff, dim), lambda i, h: (h, 0)),   # w1 rows
                pl.BlockSpec((th_eff, dim), lambda i, h: (h, 0)),   # w3 rows
                pl.BlockSpec((dim, th_eff), lambda i, h: (0, h)),   # w2 cols
            ],
            out_specs=pl.BlockSpec((tm_eff, dim), lambda i, h: (i, 0)),
            scratch_shapes=[pltpu.VMEM((tm_eff, dim), jnp.float32)],
        ),
        compiler_params=pltpu.CompilerParams(
            dimension_semantics=("parallel", "arbitrary"),
            vmem_limit_bytes=vmem_limit,
        ),
        cost_estimate=cost,
    )(x2d, w1c, w3c, w2c)

    return out2d[:M].reshape(B, S, dim)


def ffn_reference(x, w1, w2, w3):
    h = jax.nn.silu(x @ w1.T) * (x @ w3.T)
    return h @ w2.T


if __name__ == "__main__":
    # Small but tiling-exercising shapes: dim=128, hidden=512, ragged M=198.
    dim, hidden = 128, 512
    B, S = 2, 99

    key = jax.random.PRNGKey(0)
    kx, k1, k2, k3 = jax.random.split(key, 4)
    x = jax.random.normal(kx, (B, S, dim), dtype=jnp.float32)
    # nn.Linear weight shapes: (out_features, in_features).
    w1 = jax.random.uniform(k1, (hidden, dim), jnp.float32, -1.0, 1.0) / jnp.sqrt(dim)
    w2 = jax.random.uniform(k2, (dim, hidden), jnp.float32, -1.0, 1.0) / jnp.sqrt(hidden)
    w3 = jax.random.uniform(k3, (hidden, dim), jnp.float32, -1.0, 1.0) / jnp.sqrt(dim)

    # 1) f32 compute path with multi-step hidden accumulation (th=128 -> 4
    #    steps) and ragged-M padding; tight tolerance vs f32 reference.
    out_f32 = ffn_pallas(x, w1, w2, w3, th=128, compute_dtype=jnp.float32)
    out_f32 = jax.block_until_ready(out_f32)
    ref = ffn_reference(x, w1, w2, w3)
    assert out_f32.shape == (B, S, dim)
    assert jnp.allclose(out_f32, ref, atol=1e-4, rtol=1e-4), "f32 mismatch vs reference"

    # 2) bf16 compute path (production default), compared against a reference
    #    evaluated in f32 on bf16-rounded operands.
    out_bf16 = ffn_pallas(x, w1, w2, w3)   # compute_dtype=bf16 default
    out_bf16 = jax.block_until_ready(out_bf16)
    f32 = jnp.float32
    ref_bf16 = ffn_reference(x.astype(jnp.bfloat16).astype(f32),
                             w1.astype(jnp.bfloat16).astype(f32),
                             w2.astype(jnp.bfloat16).astype(f32),
                             w3.astype(jnp.bfloat16).astype(f32))
    assert jnp.allclose(out_bf16, ref_bf16, atol=5e-2, rtol=5e-2), "bf16 mismatch vs reference"

    print("KERNEL_OK")
</pallas_src>

<mosaic_0001>
module attributes {stable_mosaic.version = 11 : i64} {
  func.func @_ffn_kernel(%arg0: i32, %arg1: i32, %arg2: memref<200x128xf32, #tpu.memory_space<vmem>>, %arg3: memref<128x128xf32, #tpu.memory_space<vmem>>, %arg4: memref<128x128xf32, #tpu.memory_space<vmem>>, %arg5: memref<128x128xf32, #tpu.memory_space<vmem>>, %arg6: memref<200x128xf32, #tpu.memory_space<vmem>>, %arg7: memref<200x128xf32, #tpu.memory_space<vmem>>) attributes {dimension_semantics = [#tpu.dimension_semantics<parallel>, #tpu.dimension_semantics<arbitrary>], iteration_bounds = array<i64: 1, 4>, scalar_prefetch = 0 : i64, scratch_operands = 1 : i64, tpu.core_type = #tpu.core_type<tc>, window_params = [{transform_indices = @transform_0, window_bounds = array<i64: 200, 128>}, {transform_indices = @transform_1, window_bounds = array<i64: 128, 128>}, {transform_indices = @transform_2, window_bounds = array<i64: 128, 128>}, {transform_indices = @transform_3, window_bounds = array<i64: 128, 128>}, {transform_indices = @transform_4, window_bounds = array<i64: 200, 128>}]} {
    %c0_i32 = arith.constant 0 : i32
    %0 = arith.cmpi eq, %arg1, %c0_i32 : i32
    %1 = arith.extui %0 : i1 to i32
    %c0_i32_0 = arith.constant 0 : i32
    %2 = arith.cmpi ne, %1, %c0_i32_0 : i32
    scf.if %2 {
      %cst_16 = arith.constant 0.000000e+00 : f32
      %23 = vector.broadcast %cst_16 : f32 to vector<200x128xf32>
      %c0_17 = arith.constant 0 : index
      %c0_18 = arith.constant 0 : index
      %24 = vector.load %arg7[%c0_17, %c0_18] : memref<200x128xf32, #tpu.memory_space<vmem>>, vector<200x128xf32>
      tpu.vector_store %arg7[%c0_17, %c0_18], %23 {strides = array<i32>} : memref<200x128xf32, #tpu.memory_space<vmem>>, vector<200x128xf32>,
    } else {
    }
    %c0 = arith.constant 0 : index
    %c0_1 = arith.constant 0 : index
    %3 = vector.load %arg2[%c0, %c0_1] : memref<200x128xf32, #tpu.memory_space<vmem>>, vector<200x128xf32>
    %c0_2 = arith.constant 0 : index
    %c0_3 = arith.constant 0 : index
    %4 = vector.load %arg3[%c0_2, %c0_3] : memref<128x128xf32, #tpu.memory_space<vmem>>, vector<128x128xf32>
    %cst = arith.constant dense<0.000000e+00> : vector<200x128xf32>
    %5 = tpu.matmul %3, %4, %cst {dimension_numbers = #tpu.dot_dimension_numbers<[1], [1], [0], [0], [0, 0, 1, 0], [], []>} : vector<200x128xf32>, vector<128x128xf32>, vector<200x128xf32> -> vector<200x128xf32>
    %c0_4 = arith.constant 0 : index
    %c0_5 = arith.constant 0 : index
    %6 = vector.load %arg4[%c0_4, %c0_5] : memref<128x128xf32, #tpu.memory_space<vmem>>, vector<128x128xf32>
    %cst_6 = arith.constant dense<0.000000e+00> : vector<200x128xf32>
    %7 = tpu.matmul %3, %6, %cst_6 {dimension_numbers = #tpu.dot_dimension_numbers<[1], [1], [0], [0], [0, 0, 1, 0], [], []>} : vector<200x128xf32>, vector<128x128xf32>, vector<200x128xf32> -> vector<200x128xf32>
    %8 = arith.negf %5 : vector<200x128xf32>
    %9 = math.exp %8 : vector<200x128xf32>
    %cst_7 = arith.constant 1.000000e+00 : f32
    %10 = vector.broadcast %cst_7 : f32 to vector<200x128xf32>
    %11 = arith.addf %10, %9 : vector<200x128xf32>
    %12 = arith.divf %10, %11 : vector<200x128xf32>
    %13 = arith.mulf %5, %12 : vector<200x128xf32>
    %14 = arith.mulf %13, %7 : vector<200x128xf32>
    %c0_8 = arith.constant 0 : index
    %c0_9 = arith.constant 0 : index
    %15 = vector.load %arg7[%c0_8, %c0_9] : memref<200x128xf32, #tpu.memory_space<vmem>>, vector<200x128xf32>
    %c0_10 = arith.constant 0 : index
    %c0_11 = arith.constant 0 : index
    %16 = vector.load %arg5[%c0_10, %c0_11] : memref<128x128xf32, #tpu.memory_space<vmem>>, vector<128x128xf32>
    %cst_12 = arith.constant dense<0.000000e+00> : vector<200x128xf32>
    %17 = tpu.matmul %14, %16, %cst_12 {dimension_numbers = #tpu.dot_dimension_numbers<[1], [1], [0], [0], [0, 0, 1, 0], [], []>} : vector<200x128xf32>, vector<128x128xf32>, vector<200x128xf32> -> vector<200x128xf32>
    %18 = arith.addf %15, %17 : vector<200x128xf32>
    %c0_13 = arith.constant 0 : index
    %c0_14 = arith.constant 0 : index
    %19 = vector.load %arg7[%c0_13, %c0_14] : memref<200x128xf32, #tpu.memory_space<vmem>>, vector<200x128xf32>
    tpu.vector_store %arg7[%c0_13, %c0_14], %18 {strides = array<i32>} : memref<200x128xf32, #tpu.memory_space<vmem>>, vector<200x128xf32>,
    %c3_i32 = arith.constant 3 : i32
    %20 = arith.cmpi eq, %arg1, %c3_i32 : i32
    %21 = arith.extui %20 : i1 to i32
    %c0_i32_15 = arith.constant 0 : i32
    %22 = arith.cmpi ne, %21, %c0_i32_15 : i32
    scf.if %22 {
      %c0_16 = arith.constant 0 : index
      %c0_17 = arith.constant 0 : index
      %23 = vector.load %arg7[%c0_16, %c0_17] : memref<200x128xf32, #tpu.memory_space<vmem>>, vector<200x128xf32>
      %c0_18 = arith.constant 0 : index
      %c0_19 = arith.constant 0 : index
      %24 = vector.load %arg6[%c0_18, %c0_19] : memref<200x128xf32, #tpu.memory_space<vmem>>, vector<200x128xf32>
      tpu.vector_store %arg6[%c0_18, %c0_19], %23 {strides = array<i32>} : memref<200x128xf32, #tpu.memory_space<vmem>>, vector<200x128xf32>,
    } else {
    }
    return
  }
  func.func @transform_0(%arg0: i32, %arg1: i32) -> (i32, i32) {
    %c0_i32 = arith.constant 0 : i32
    %c0_i32_0 = arith.constant 0 : i32
    return %arg0, %c0_i32 : i32, i32
  }
  func.func @transform_1(%arg0: i32, %arg1: i32) -> (i32, i32) {
    %c0_i32 = arith.constant 0 : i32
    %c0_i32_0 = arith.constant 0 : i32
    return %arg1, %c0_i32 : i32, i32
  }
  func.func @transform_2(%arg0: i32, %arg1: i32) -> (i32, i32) {
    %c0_i32 = arith.constant 0 : i32
    %c0_i32_0 = arith.constant 0 : i32
    return %arg1, %c0_i32 : i32, i32
  }
  func.func @transform_3(%arg0: i32, %arg1: i32) -> (i32, i32) {
    %c0_i32 = arith.constant 0 : i32
    %c0_i32_0 = arith.constant 0 : i32
    return %c0_i32, %arg1 : i32, i32
  }
  func.func @transform_4(%arg0: i32, %arg1: i32) -> (i32, i32) {
    %c0_i32 = arith.constant 0 : i32
    %c0_i32_0 = arith.constant 0 : i32
    return %arg0, %c0_i32 : i32, i32
  }
}

</mosaic_0001>

<bundles_post_ra>
// kernel: ffn_pallas.1
= control target key start
LH: loop header
LB: loop body
LE: loop exit
PB: predicated region body
PF: predicated region fallthrough
CT: control target
= control target key end

     0   :  { %9 = vsyncpa [#allocation4], 0  ;;  %s2921_s0 = inlined_call_operand.vmem [shape: f32[200,128], index: 0, kind: input, shape index: {}]   ;;  %s2922_s1 = inlined_call_operand.vmem [shape: f32[512,128], index: 1, kind: input, shape index: {}]   ;;  %s2923_s2 = inlined_call_operand.vmem [shape: f32[512,128], index: 2, kind: input, shape index: {}]   ;;  %s2924_s3 = inlined_call_operand.hbm [shape: f32[128,512], index: 3, kind: input, shape index: {}]   ;;  %s2925_s4 = inlined_call_operand.vmem [shape: f32[200,128], index: 4, kind: output, shape index: {}]  }
   0x1   :  { %11 = vsyncpa [#allocation4 + $0x1], 0  ;;  %s2261_s15 = smov 0   ;;  %s2263_s16 = smov 0  }
   0x2   :  { %s2265_s17 = smov 0   ;;  %s2267_s18 = smov 0  }
   0x3   :  { %s2269_s19 = smov 0   ;;  %s2271_s20 = smov 0  }
   0x4 LB: > { %s1409_s21 = sadd.s32 4294967295, %s2226_s20   ;;  %s26_s22 = sadd.s32 1, %s2222_s19  ;;  %s2226_s20 = sphi %s2271_s20, %s17_s20   ;;  %s2222_s19 = sphi %s2269_s19, %s2934_s19   ;;  %s2218_s18 = sphi %s2267_s18, %s2933_s18   ;;  %s2214_s17 = sphi %s2265_s17, %s2932_s17   ;;  %s2210_s16 = sphi %s2263_s16, %s2931_s16   ;;  %s2206_s15 = sphi %s2261_s15, %s2930_s15  }
   0x5   : > { %p27_p0 = scmp.ge.s32.totalorder %s26_s22, 4  ;;  %s114_s23 = sadd.s32 1, %s2214_s17 }
   0x6   : > { %p121_p1 = scmp.ne.s32.totalorder %s2214_s17, %s2210_s16  ;;  %p122_p2 = scmp.eq.s32.totalorder %s2226_s20, 0 }
   0x7   : > { %s2936_s22 = smov (%p27_p0, %s26_s22), 0  ;;  %p127_p4 = scmp.ne.s32.totalorder %s2210_s16, %s2206_s15 }
   0x8   : > { %p2297_p3 = por %p122_p2, %p121_p1  ;;  %s111_s25 = ssub.s32 %s2222_s19, %s2936_s22 }
   0x9   : > { %p128_p5 = scmp.eq.s32.totalorder %s1409_s21, 0  ;;  %p112_p6 = scmp.eq.s32.totalorder %s111_s25, 0 }
   0xa   : > { %p1990_p8 = scmp.lt.s32.totalorder %s2226_s20, 4  ;;  %s204_s28 = sand.u32 1, %s2214_s17  }
   0xb   : > { %p2304_p7 = por %p128_p5, %p127_p4  ;;  %s1414_s29 = sshll.u32 %s2222_s19, 7 }
   0xc   : > { %s2310_s27 = scalar_select %p112_p6, %s2214_s17, %s114_s23  }
   0xd   : > { %s1413_s30 = sshll.u32 %s204_s28, 7  ;;  %s2317_s7 = scalar_lea.hbm %s2924_s3, %s1414_s29 }
   0xe   : > { %s208_s8 = scalar_lea.vmem [#allocation3], %s1413_s30  ;;  %p2321_p9 = pnand %p1990_p8, %p2297_p3 }
   0xf   : > { %s214_s9 = sshll.u32 %s208_s8, 4  ;;  %s2328_s11 = scalar_lea.sflag [#allocation4], %s204_s28  ;;  %s2325_s9 = int_to_ptr.vmem [resolvable:$true] %s214_s9 }
  0x10   : > { %s2146_s12 = scalar_lea.hbm %s2317_s7, 2048  ;;  %p2148_p12 = pneg %p2321_p9 }
  0x11   : > { %p2147_p11 = scmp.ne.s32.totalorder %s2317_s7, %s2146_s12  ;;  %s2151_s15 = scalar_lea.hbm %s2924_s3, 8192 }
  0x12   : > { %p2152_p1 = scmp.lt.u32.totalorder %s2317_s7, %s2924_s3  ;;  %p2153_p2 = scmp.lt.u32.totalorder %s2151_s15, %s2146_s12 }
  0x13   : > { %p2149_p13 = pnand %p2148_p12, %p2147_p11  ;;  %p2155_p4 = scmp.lt.u32.totalorder %s2146_s12, %s2317_s7 }
  0x14   : > { %p2154_p3 = por %p2153_p2, %p2152_p1 }
  0x15   : > { %p2150_p0 = pneg %p2149_p13 }
  0x16   : > { %p2156_p5 = por %p2155_p4, %p2154_p3 }
  0x18   : > { %p2157_p6 = pnand %p2156_p5, %p2150_p0 }
  0x1a   : > { %2160 = shalt.err (!%p2157_p6)
}
  0x1b   : > { %s2161_s24 = scalar_lea.vmem %s2325_s9, 2048  ;;  %s2228_s25 = smov [#allocation3]  }
  0x1c   : > { %p2162_p8 = scmp.ne.s32.totalorder %s2325_s9, %s2161_s24  ;;  %s2166_s28 = sshll.u32 %s2228_s25, 4  ;;  %s2167_s28 = int_to_ptr.vmem [resolvable:$false] %s2166_s28 }
  0x1d   : > { %s2168_s29 = scalar_lea.vmem %s2167_s28, 4096  ;;  %p2169_p10 = scmp.lt.s32.totalorder %s2325_s9, %s2167_s28 }
  0x1e   : > { %p2164_p11 = pnand %p2162_p8, %p2148_p12  ;;  %p2170_p1 = scmp.lt.s32.totalorder %s2168_s29, %s2161_s24 }
  0x20   : > { %p2165_p13 = pneg %p2164_p11  ;;  %p2171_p2 = por %p2170_p1, %p2169_p10 }
  0x22   : > { %p2172_p3 = pnand %p2171_p2, %p2165_p13 }
  0x24   : > { %2175 = shalt.err (!%p2172_p3)
}
  0x25   : > { %s2229_s30 = smov 512   ;;  %s2230_s5 = smov 128  }
  0x26   : > { %s2231_s6 = smov 8   ;;  %p222_p12 = scmp.lt.s32.totalorder %s2226_s20, 5 }
  0x27   : > { %1989 = dma.hbm_to_vmem [thread:$0]  (!%p2321_p9), %s2317_s7, 2048, %s2325_s9, %s2328_s11, %s2229_s30, %s2230_s5, %s2231_s6  }
  0x28   : > { %p2929_p0 = scmp.ge.s32.totalorder %s2226_s20, 1 }
  0x2a   : > { %p223_p4 = pnand %p2929_p0, %p222_p12 }
  0x2b   : > { %s228_s8 = sand.u32 (!%p223_p4), 1, %s2210_s16  }
  0x2c   : > { %226 = sbr.rel (%p223_p4) target bundleno = 694 (0x2b6), region = 36  ;;  %s1416_s12 = sshll.u32 (!%p223_p4), %s228_s8, 7 }
  0x2d   : > { %s229_s13 = scalar_lea.sflag (!%p223_p4), [#allocation4], %s228_s8  ;;  %s2360_s14 = scalar_lea.vmem (!%p223_p4), [#allocation3], %s1416_s12 }
  0x33   : > { %2201 = dma.done.wait (%p2304_p7), %s229_s13, 2048  }
  0x34   : > { %2203 = vsyncadd (%p2304_p7), %s229_s13, 4294965248  ;;  %s1417_s15 = sshll.u32 %s2218_s18, 4  ;;  %p1421_p9 = scmp.ne.s32.totalorder %s2218_s18, 0 }
  0x35   : > { %p279_p10 = scmp.lt.s32.totalorder %s1417_s15, 63  ;;  %v2232_v0 = vmov (!%p1421_p9), 0.0  }
  0x36   : > { %299 = sbr.rel (%p1421_p9) target bundleno = 67 (0x43), region = 44  ;;  %300 = vst [vmem:[#allocation2] sm:$0xff] (!%p1421_p9), %v2232_v0  ;;  %301 = vst [vmem:[#allocation2 + $0x8] sm:$0xff] (!%p1421_p9), %v2232_v0 }
  0x37   : > { %s2938_s15 = smov (!%p279_p10, %s1417_s15), 63  ;;  %302 = vst [vmem:[#allocation2 + $0x10] sm:$0xff] (!%p1421_p9), %v2232_v0  ;;  %303 = vst [vmem:[#allocation2 + $0x18] sm:$0xff] (!%p1421_p9), %v2232_v0 }
  0x38   : > { %s1418_s7 = sshll.u32 %s2938_s15, 3  ;;  %304 = vst [vmem:[#allocation2 + $0x20] sm:$0xff] (!%p1421_p9), %v2232_v0  ;;  %305 = vst [vmem:[#allocation2 + $0x28] sm:$0xff] (!%p1421_p9), %v2232_v0 }
  0x39   : > { %s2370_s11 = scalar_lea.vmem %s2922_s1, %s1418_s7  ;;  %s2375_s24 = scalar_lea.vmem %s2923_s2, %s1418_s7  ;;  %306 = vst [vmem:[#allocation2 + $0x30] sm:$0xff] (!%p1421_p9), %v2232_v0  ;;  %307 = vst [vmem:[#allocation2 + $0x38] sm:$0xff] (!%p1421_p9), %v2232_v0 }
  0x3a   : > { %308 = vst [vmem:[#allocation2 + $0x40] sm:$0xff] (!%p1421_p9), %v2232_v0  ;;  %309 = vst [vmem:[#allocation2 + $0x48] sm:$0xff] (!%p1421_p9), %v2232_v0 }
  0x3b   : > { %310 = vst [vmem:[#allocation2 + $0x50] sm:$0xff] (!%p1421_p9), %v2232_v0  ;;  %311 = vst [vmem:[#allocation2 + $0x58] sm:$0xff] (!%p1421_p9), %v2232_v0 }
  0x3c   : > { %312 = vst [vmem:[#allocation2 + $0x60] sm:$0xff] (!%p1421_p9), %v2232_v0  ;;  %313 = vst [vmem:[#allocation2 + $0x68] sm:$0xff] (!%p1421_p9), %v2232_v0 }
  0x3d   : > { %314 = vst [vmem:[#allocation2 + $0x70] sm:$0xff] %v2232_v0  ;;  %315 = vst [vmem:[#allocation2 + $0x78] sm:$0xff] %v2232_v0 }
  0x3e   : > { %316 = vst [vmem:[#allocation2 + $0x80] sm:$0xff] %v2232_v0  ;;  %317 = vst [vmem:[#allocation2 + $0x88] sm:$0xff] %v2232_v0 }
  0x3f   : > { %318 = vst [vmem:[#allocation2 + $0x90] sm:$0xff] %v2232_v0  ;;  %319 = vst [vmem:[#allocation2 + $0x98] sm:$0xff] %v2232_v0 }
  0x40   : > { %320 = vst [vmem:[#allocation2 + $0xa0] sm:$0xff] %v2232_v0  ;;  %321 = vst [vmem:[#allocation2 + $0xa8] sm:$0xff] %v2232_v0 }
  0x41   : > { %322 = vst [vmem:[#allocation2 + $0xb0] sm:$0xff] %v2232_v0  ;;  %323 = vst [vmem:[#allocation2 + $0xb8] sm:$0xff] %v2232_v0 }
  0x42   : > { %324 = vst [vmem:[#allocation2 + $0xc0] sm:$0xff] %v2232_v0 }
  0x43 PF: > { %v350_v1 = vld [vmem:[%s2370_s11] sm:$0xff]  ;;  %v351_v2 = vld [vmem:[%s2370_s11 + $0x8] sm:$0xff]  ;;  %v2233_v3 = vmov 0.0|0.0   ;;  %vm2234_vm0 = vmmov 0   ;;  %v2235_v6 = vmov 0.0   ;;  %v352_v8 = vld [vmem:[%s2370_s11 + $0x10] sm:$0xff] }
  0x44   : > { %1896 = vmatprep.subr.bf16.mxu0 %v2233_v3  ;;  %v1897_v4 = vpack.c.bf16 %v351_v2, %v350_v1  ;;  %1920 = vmatprep.subr.bf16.mxu1 %v2233_v3  ;;  %v556_v5 = vld [vmem:[%s2375_s24] sm:$0xff]  ;;  %v557_v7 = vld [vmem:[%s2375_s24 + $0x8] sm:$0xff]  ;;  %v353_v9 = vld [vmem:[%s2370_s11 + $0x18] sm:$0xff]  ;;  %p1447_p7 = scmp.ne.s32.totalorder %s2218_s18, 3 }
  0x45   : > { %1607 = vmatprep.mubr.msk.f32.mxu0 %vm2234_vm0, %v2235_v6  ;;  %1714 = vmatprep.mubr.msk.f32.mxu1 %vm2234_vm0, %v2235_v6  ;;  %v1921_v10 = vpack.c.bf16 %v557_v7, %v556_v5  ;;  %v1900_v11 = vpack.c.bf16 %v353_v9, %v352_v8  ;;  %v558_v12 = vld [vmem:[%s2375_s24 + $0x10] sm:$0xff]  ;;  %v559_v13 = vld [vmem:[%s2375_s24 + $0x18] sm:$0xff]  ;;  %v354_v15 = vld [vmem:[%s2370_s11 + $0x20] sm:$0xff] }
  0x46   : > { %1898 = vmatpush3.bf16.xpose.msra.mxu0 %v1897_v4  ;;  %v1924_v14 = vpack.c.bf16 %v559_v13, %v558_v12  ;;  %v355_v16 = vld [vmem:[%s2370_s11 + $0x28] sm:$0xff]  ;;  %v560_v18 = vld [vmem:[%s2375_s24 + $0x20] sm:$0xff]  ;;  %v356_v21 = vld [vmem:[%s2370_s11 + $0x30] sm:$0xff] }
  0x47   : > { %1899 = vmatprep.subr.bf16.mxu0 %v2233_v3  ;;  %1922 = vmatpush3.bf16.xpose.msra.mxu1 %v1921_v10  ;;  %v1903_v17 = vpack.c.bf16 %v355_v16, %v354_v15  ;;  %v561_v19 = vld [vmem:[%s2375_s24 + $0x28] sm:$0xff]  ;;  %v357_v22 = vld [vmem:[%s2370_s11 + $0x38] sm:$0xff]  ;;  %v562_v24 = vld [vmem:[%s2375_s24 + $0x30] sm:$0xff] }
  0x48   : > { %1923 = vmatprep.subr.bf16.mxu1 %v2233_v3  ;;  %v1927_v20 = vpack.c.bf16 %v561_v19, %v560_v18  ;;  %v1906_v23 = vpack.c.bf16 %v357_v22, %v356_v21  ;;  %v563_v25 = vld [vmem:[%s2375_s24 + $0x38] sm:$0xff]  ;;  %v358_v27 = vld [vmem:[%s2370_s11 + $0x40] sm:$0xff]  ;;  %v359_v28 = vld [vmem:[%s2370_s11 + $0x48] sm:$0xff] }
  0x49   : > { %v1930_v26 = vpack.c.bf16 %v563_v25, %v562_v24  ;;  %v1909_v29 = vpack.c.bf16 %v359_v28, %v358_v27  ;;  %v564_v30 = vld [vmem:[%s2375_s24 + $0x40] sm:$0xff]  ;;  %v565_v31 = vld [vmem:[%s2375_s24 + $0x48] sm:$0xff]  ;;  %v360_v33 = vld [vmem:[%s2370_s11 + $0x50] sm:$0xff] }
  0x4a   : > { %v1933_v32 = vpack.c.bf16 %v565_v31, %v564_v30  ;;  %v361_v34 = vld [vmem:[%s2370_s11 + $0x58] sm:$0xff]  ;;  %v566_v36 = vld [vmem:[%s2375_s24 + $0x50] sm:$0xff]  ;;  %v362_v39 = vld [vmem:[%s2370_s11 + $0x60] sm:$0xff] }
  0x4b   : > { %v1912_v35 = vpack.c.bf16 %v361_v34, %v360_v33  ;;  %v567_v37 = vld [vmem:[%s2375_s24 + $0x58] sm:$0xff]  ;;  %v363_v40 = vld [vmem:[%s2370_s11 + $0x68] sm:$0xff]  ;;  %v568_v42 = vld [vmem:[%s2375_s24 + $0x60] sm:$0xff] }
  0x4c   : > { %v1936_v38 = vpack.c.bf16 %v567_v37, %v566_v36  ;;  %v1915_v41 = vpack.c.bf16 %v363_v40, %v362_v39  ;;  %v569_v43 = vld [vmem:[%s2375_s24 + $0x68] sm:$0xff]  ;;  %v364_v45 = vld [vmem:[%s2370_s11 + $0x70] sm:$0xff]  ;;  %v365_v46 = vld [vmem:[%s2370_s11 + $0x78] sm:$0xff] }
  0x4d   : > { %v1939_v44 = vpack.c.bf16 %v569_v43, %v568_v42  ;;  %v1918_v47 = vpack.c.bf16 %v365_v46, %v364_v45  ;;  %v570_v48 = vld [vmem:[%s2375_s24 + $0x70] sm:$0xff]  ;;  %v571_v49 = vld [vmem:[%s2375_s24 + $0x78] sm:$0xff]  ;;  %v987_v51 = vld [vmem:[%s2360_s14] sm:$0xff] }
  0x4e   : > { %1901 = vmatpush3.bf16.xpose.msra.mxu0 %v1900_v11  ;;  %v1942_v50 = vpack.c.bf16 %v571_v49, %v570_v48  ;;  %v988_v52 = vld [vmem:[%s2360_s14 + $0x8] sm:$0xff]  ;;  %v325_v53 = vld [vmem:[%s2921_s0] sm:$0xff]  ;;  %v326_v55 = vld [vmem:[%s2921_s0 + $0x8] sm:$0xff] }
  0x4f   : > { %1902 = vmatprep.subr.bf16.mxu0 %v2233_v3  ;;  %1925 = vmatpush3.bf16.xpose.msra.mxu1 %v1924_v14  ;;  %v1945_v54 = vpack.c.bf16 %v988_v52, %v987_v51  ;;  %v989_v56 = vld [vmem:[%s2360_s14 + $0x10] sm:$0xff]  ;;  %v990_v57 = vld [vmem:[%s2360_s14 + $0x18] sm:$0xff]  ;;  %v327_v58 = vld [vmem:[%s2921_s0 + $0x10] sm:$0xff] }
  0x50   : > { %1926 = vmatprep.subr.bf16.mxu1 %v2233_v3  ;;  %v1948_v59 = vpack.c.bf16 %v990_v57, %v989_v56  ;;  %v328_v60 = vld [vmem:[%s2921_s0 + $0x18] sm:$0xff]  ;;  %v991_v61 = vld [vmem:[%s2360_s14 + $0x20] sm:$0xff]  ;;  %v992_v62 = vld [vmem:[%s2360_s14 + $0x28] sm:$0xff] }
  0x51   : > { %v329_v63 = vld [vmem:[%s2921_s0 + $0x20] sm:$0xff]  ;;  %v1951_v0 = vpack.c.bf16 %v992_v62, %v991_v61  ;;  %v330_v1 = vld [vmem:[%s2921_s0 + $0x28] sm:$0xff]  ;;  %v993_v2 = vld [vmem:[%s2360_s14 + $0x30] sm:$0xff] }
  0x52   : > { %v994_v4 = vld [vmem:[%s2360_s14 + $0x38] sm:$0xff]  ;;  %v331_v5 = vld [vmem:[%s2921_s0 + $0x30] sm:$0xff]  ;;  %v332_v8 = vld [vmem:[%s2921_s0 + $0x38] sm:$0xff] }
  0x53   : > { %v1954_v7 = vpack.c.bf16 %v994_v4, %v993_v2  ;;  %v333_v9 = vld [vmem:[%s2921_s0 + $0x40] sm:$0xff]  ;;  %v334_v10 = vld [vmem:[%s2921_s0 + $0x48] sm:$0xff]  ;;  %v335_v11 = vld [vmem:[%s2921_s0 + $0x50] sm:$0xff] }
  0x54   : > { %v336_v12 = vld [vmem:[%s2921_s0 + $0x58] sm:$0xff]  ;;  %v337_v13 = vld [vmem:[%s2921_s0 + $0x60] sm:$0xff]  ;;  %v338_v14 = vld [vmem:[%s2921_s0 + $0x68] sm:$0xff] }
  0x55   : > { %v339_v15 = vld [vmem:[%s2921_s0 + $0x70] sm:$0xff]  ;;  %v340_v16 = vld [vmem:[%s2921_s0 + $0x78] sm:$0xff]  ;;  %v342_v18 = vld [vmem:[%s2921_s0 + $0x88] sm:$0xff] }
  0x56   : > { %1904 = vmatpush3.bf16.xpose.msra.mxu0 %v1903_v17  ;;  %v341_v17 = vld [vmem:[%s2921_s0 + $0x80] sm:$0xff]  ;;  %v343_v19 = vld [vmem:[%s2921_s0 + $0x90] sm:$0xff]  ;;  %v995_v22 = vld [vmem:[%s2360_s14 + $0x40] sm:$0xff] }
  0x57   : > { %1905 = vmatprep.subr.bf16.mxu0 %v2233_v3  ;;  %1928 = vmatpush3.bf16.xpose.msra.mxu1 %v1927_v20  ;;  %v344_v20 = vld [vmem:[%s2921_s0 + $0x98] sm:$0xff]  ;;  %v345_v21 = vld [vmem:[%s2921_s0 + $0xa0] sm:$0xff]  ;;  %v346_v24 = vld [vmem:[%s2921_s0 + $0xa8] sm:$0xff] }
  0x58   : > { %1929 = vmatprep.subr.bf16.mxu1 %v2233_v3  ;;  %v997_v27 = vld [vmem:[%s2360_s14 + $0x50] sm:$0xff]  ;;  %v998_v28 = vld [vmem:[%s2360_s14 + $0x58] sm:$0xff]  ;;  %v1000_v33 = vld [vmem:[%s2360_s14 + $0x68] sm:$0xff] }
  0x59   : > { %v1960_v30 = vpack.c.bf16 %v998_v28, %v997_v27  ;;  %v349_v31 = vld [vmem:[%s2921_s0 + $0xc0] sm:$0xff] }
  0x5a   : > { %v1002_v36 = vld [vmem:[%s2360_s14 + $0x78] sm:$0xff] }
  0x5e   : > { %1907 = vmatpush3.bf16.xpose.msra.mxu0 %v1906_v23  ;;  %v996_v23 = vld [vmem:[%s2360_s14 + $0x48] sm:$0xff] }
  0x5f   : > { %1908 = vmatprep.subr.bf16.mxu0 %v2233_v3  ;;  %1931 = vmatpush3.bf16.xpose.msra.mxu1 %v1930_v26  ;;  %v1957_v25 = vpack.c.bf16 %v996_v23, %v995_v22  ;;  %v347_v26 = vld [vmem:[%s2921_s0 + $0xb0] sm:$0xff] }
  0x60   : > { %1932 = vmatprep.subr.bf16.mxu1 %v2233_v3 }
  0x66   : > { %1910 = vmatpush3.bf16.xpose.msra.mxu0 %v1909_v29  ;;  %v348_v29 = vld [vmem:[%s2921_s0 + $0xb8] sm:$0xff] }
  0x67   : > { %1911 = vmatprep.subr.bf16.mxu0 %v2233_v3  ;;  %1934 = vmatpush3.bf16.xpose.msra.mxu1 %v1933_v32  ;;  %v999_v32 = vld [vmem:[%s2360_s14 + $0x60] sm:$0xff] }
  0x68   : > { %1935 = vmatprep.subr.bf16.mxu1 %v2233_v3  ;;  %v1963_v34 = vpack.c.bf16 %v1000_v33, %v999_v32 }
  0x6e   : > { %1913 = vmatpush3.bf16.xpose.msra.mxu0 %v1912_v35  ;;  %v1001_v35 = vld [vmem:[%s2360_s14 + $0x70] sm:$0xff] }
  0x6f   : > { %1914 = vmatprep.subr.bf16.mxu0 %v2233_v3  ;;  %1937 = vmatpush3.bf16.xpose.msra.mxu1 %v1936_v38  ;;  %v1966_v37 = vpack.c.bf16 %v1002_v36, %v1001_v35 }
  0x70   : > { %1938 = vmatprep.subr.bf16.mxu1 %v2233_v3 }
  0x76   : > { %1916 = vmatpush3.bf16.xpose.msra.mxu0 %v1915_v41 }
  0x77   : > { %1917 = vmatprep.subr.bf16.mxu0 %v2233_v3  ;;  %1940 = vmatpush3.bf16.xpose.msra.mxu1 %v1939_v44 }
  0x78   : > { %1941 = vmatprep.subr.bf16.mxu1 %v2233_v3 }
  0x7e   : > { %1919 = vmatpush3.bf16.xpose.msra.mxu0 %v1918_v47 }
  0x7f   : > { %1944 = vmatprep.subr.bf16.mxu0 %v2233_v3  ;;  %1943 = vmatpush3.bf16.xpose.msra.mxu1 %v1942_v50 }
  0x80   : > { %1968 = vmatprep.subr.bf16.mxu1 %v2233_v3 }
  0x85   : > { %1608 = vmatmul.mubr.f32.vlgmr.msra.gmra.mrb[0].mxu0 %v325_v53 }
  0x86   : > { %1610 = vmatprep.mubr.msk.f32.mxu0 %vm2234_vm0, %v2235_v6  ;;  %1946 = vmatpush3.bf16.xpose.msra.mxu0 %v1945_v54 }
  0x87   : > { %1947 = vmatprep.subr.bf16.mxu0 %v2233_v3  ;;  %1715 = vmatmul.mubr.f32.vlgmr.msra.gmra.mrb[0].mxu1 %v325_v53 }
  0x88   : > { %1717 = vmatprep.mubr.msk.f32.mxu1 %vm2234_vm0, %v2235_v6  ;;  %1976 = vmatpush3.bf16.xpose.msra.mxu1 %v1945_v54 }
  0x89   : > { %1611 = vmatmul.mubr.f32.gmra.mrb[2].mxu0 %v326_v55  ;;  %1969 = vmatprep.subr.bf16.mxu1 %v2233_v3 }
  0x8a   : > { %1613 = vmatprep.mubr.msk.f32.mxu0 %vm2234_vm0, %v2235_v6 }
  0x8b   : > { %1718 = vmatmul.mubr.f32.gmra.mrb[2].mxu1 %v326_v55 }
  0x8c   : > { %1720 = vmatprep.mubr.msk.f32.mxu1 %vm2234_vm0, %v2235_v6 }
  0x8d   : > { %1614 = vmatmul.mubr.f32.gmra.mrb[4].mxu0 %v327_v58 }
  0x8e   : > { %1616 = vmatprep.mubr.msk.f32.mxu0 %vm2234_vm0, %v2235_v6  ;;  %1949 = vmatpush3.bf16.xpose.msra.mxu0 %v1948_v59 }
  0x8f   : > { %1950 = vmatprep.subr.bf16.mxu0 %v2233_v3  ;;  %1721 = vmatmul.mubr.f32.gmra.mrb[4].mxu1 %v327_v58 }
  0x90   : > { %1723 = vmatprep.mubr.msk.f32.mxu1 %vm2234_vm0, %v2235_v6  ;;  %1977 = vmatpush3.bf16.xpose.msra.mxu1 %v1948_v59 }
  0x91   : > { %1617 = vmatmul.mubr.f32.gmra.mrb[6].mxu0 %v328_v60  ;;  %1970 = vmatprep.subr.bf16.mxu1 %v2233_v3 }
  0x92   : > { %1619 = vmatprep.mubr.msk.f32.mxu0 %vm2234_vm0, %v2235_v6 }
  0x93   : > { %1724 = vmatmul.mubr.f32.gmra.mrb[6].mxu1 %v328_v60 }
  0x94   : > { %1726 = vmatprep.mubr.msk.f32.mxu1 %vm2234_vm0, %v2235_v6 }
  0x95   : > { %1620 = vmatmul.mubr.f32.gmra.mrb[8].mxu0 %v329_v63 }
  0x96   : > { %1622 = vmatprep.mubr.msk.f32.mxu0 %vm2234_vm0, %v2235_v6  ;;  %1952 = vmatpush3.bf16.xpose.msra.mxu0 %v1951_v0 }
  0x97   : > { %1953 = vmatprep.subr.bf16.mxu0 %v2233_v3  ;;  %1727 = vmatmul.mubr.f32.gmra.mrb[8].mxu1 %v329_v63 }
  0x98   : > { %1729 = vmatprep.mubr.msk.f32.mxu1 %vm2234_vm0, %v2235_v6  ;;  %1978 = vmatpush3.bf16.xpose.msra.mxu1 %v1951_v0 }
  0x99   : > { %1623 = vmatmul.mubr.f32.gmra.mrb[10].mxu0 %v330_v1  ;;  %1971 = vmatprep.subr.bf16.mxu1 %v2233_v3 }
  0x9a   : > { %1625 = vmatprep.mubr.msk.f32.mxu0 %vm2234_vm0, %v2235_v6 }
  0x9b   : > { %1730 = vmatmul.mubr.f32.gmra.mrb[10].mxu1 %v330_v1 }
  0x9c   : > { %1732 = vmatprep.mubr.msk.f32.mxu1 %vm2234_vm0, %v2235_v6 }
  0x9d   : > { %1626 = vmatmul.mubr.f32.gmra.mrb[12].mxu0 %v331_v5 }
  0x9e   : > { %1628 = vmatprep.mubr.msk.f32.mxu0 %vm2234_vm0, %v2235_v6  ;;  %1955 = vmatpush3.bf16.xpose.msra.mxu0 %v1954_v7 }
  0x9f   : > { %1956 = vmatprep.subr.bf16.mxu0 %v2233_v3  ;;  %1733 = vmatmul.mubr.f32.gmra.mrb[12].mxu1 %v331_v5 }
  0xa0   : > { %1735 = vmatprep.mubr.msk.f32.mxu1 %vm2234_vm0, %v2235_v6  ;;  %1979 = vmatpush3.bf16.xpose.msra.mxu1 %v1954_v7 }
  0xa1   : > { %1629 = vmatmul.mubr.f32.gmra.mrb[14].mxu0 %v332_v8  ;;  %1972 = vmatprep.subr.bf16.mxu1 %v2233_v3 }
  0xa2   : > { %1631 = vmatprep.mubr.msk.f32.mxu0 %vm2234_vm0, %v2235_v6 }
  0xa3   : > { %1736 = vmatmul.mubr.f32.gmra.mrb[14].mxu1 %v332_v8 }
  0xa4   : > { %1738 = vmatprep.mubr.msk.f32.mxu1 %vm2234_vm0, %v2235_v6 }
  0xa5   : > { %1632 = vmatmul.mubr.f32.gmra.mrb[16].mxu0 %v333_v9 }
  0xa6   : > { %1634 = vmatprep.mubr.msk.f32.mxu0 %vm2234_vm0, %v2235_v6  ;;  %1958 = vmatpush3.bf16.xpose.msra.mxu0 %v1957_v25 }
  0xa7   : > { %1739 = vmatmul.mubr.f32.gmra.mrb[16].mxu1 %v333_v9  ;;  %1959 = vmatprep.subr.bf16.mxu0 %v2233_v3 }
  0xa8   : > { %1741 = vmatprep.mubr.msk.f32.mxu1 %vm2234_vm0, %v2235_v6  ;;  %1980 = vmatpush3.bf16.xpose.msra.mxu1 %v1957_v25 }
  0xa9   : > { %1635 = vmatmul.mubr.f32.gmra.mrb[18].mxu0 %v334_v10  ;;  %1973 = vmatprep.subr.bf16.mxu1 %v2233_v3 }
  0xaa   : > { %1637 = vmatprep.mubr.msk.f32.mxu0 %vm2234_vm0, %v2235_v6 }
  0xab   : > { %1742 = vmatmul.mubr.f32.gmra.mrb[18].mxu1 %v334_v10 }
  0xac   : > { %1744 = vmatprep.mubr.msk.f32.mxu1 %vm2234_vm0, %v2235_v6 }
  0xad   : > { %1638 = vmatmul.mubr.f32.gmra.mrb[20].mxu0 %v335_v11 }
  0xae   : > { %1640 = vmatprep.mubr.msk.f32.mxu0 %vm2234_vm0, %v2235_v6  ;;  %1961 = vmatpush3.bf16.xpose.msra.mxu0 %v1960_v30 }
  0xaf   : > { %1745 = vmatmul.mubr.f32.gmra.mrb[20].mxu1 %v335_v11  ;;  %1962 = vmatprep.subr.bf16.mxu0 %v2233_v3 }
  0xb0   : > { %1747 = vmatprep.mubr.msk.f32.mxu1 %vm2234_vm0, %v2235_v6  ;;  %1981 = vmatpush3.bf16.xpose.msra.mxu1 %v1960_v30 }
  0xb1   : > { %1641 = vmatmul.mubr.f32.gmra.mrb[22].mxu0 %v336_v12  ;;  %1974 = vmatprep.subr.bf16.mxu1 %v2233_v3 }
  0xb2   : > { %1643 = vmatprep.mubr.msk.f32.mxu0 %vm2234_vm0, %v2235_v6 }
  0xb3   : > { %1748 = vmatmul.mubr.f32.gmra.mrb[22].mxu1 %v336_v12 }
  0xb4   : > { %1750 = vmatprep.mubr.msk.f32.mxu1 %vm2234_vm0, %v2235_v6 }
  0xb5   : > { %1644 = vmatmul.mubr.f32.gmra.mrb[24].mxu0 %v337_v13 }
  0xb6   : > { %1646 = vmatprep.mubr.msk.f32.mxu0 %vm2234_vm0, %v2235_v6  ;;  %1964 = vmatpush3.bf16.xpose.msra.mxu0 %v1963_v34 }
  0xb7   : > { %1751 = vmatmul.mubr.f32.gmra.mrb[24].mxu1 %v337_v13  ;;  %1965 = vmatprep.subr.bf16.mxu0 %v2233_v3 }
  0xb8   : > { %1753 = vmatprep.mubr.msk.f32.mxu1 %vm2234_vm0, %v2235_v6  ;;  %1982 = vmatpush3.bf16.xpose.msra.mxu1 %v1963_v34 }
  0xb9   : > { %1647 = vmatmul.mubr.f32.gmra.mrb[26].mxu0 %v338_v14  ;;  %1975 = vmatprep.subr.bf16.mxu1 %v2233_v3 }
  0xba   : > { %1649 = vmatprep.mubr.msk.f32.mxu0 %vm2234_vm0, %v2235_v6 }
  0xbb   : > { %1754 = vmatmul.mubr.f32.gmra.mrb[26].mxu1 %v338_v14 }
  0xbc   : > { %1756 = vmatprep.mubr.msk.f32.mxu1 %vm2234_vm0, %v2235_v6 }
  0xbd   : > { %1650 = vmatmul.mubr.f32.gmra.mrb[28].mxu0 %v339_v15 }
  0xbe   : > { %1652 = vmatprep.mubr.msk.f32.mxu0 %vm2234_vm0, %v2235_v6  ;;  %1967 = vmatpush3.bf16.xpose.msra.mxu0 %v1966_v37 }
  0xbf   : > { %1757 = vmatmul.mubr.f32.gmra.mrb[28].mxu1 %v339_v15 }
  0xc0   : > { %1759 = vmatprep.mubr.msk.f32.mxu1 %vm2234_vm0, %v2235_v6  ;;  %1983 = vmatpush3.bf16.xpose.msra.mxu1 %v1966_v37 }
  0xc1   : > { %1653 = vmatmul.mubr.f32.gmra.mrb[30].mxu0 %v340_v16 }
  0xc2   : > { %1655 = vmatprep.mubr.msk.f32.mxu0 %vm2234_vm0, %v2235_v6 }
  0xc3   : > { %1760 = vmatmul.mubr.f32.gmra.mrb[30].mxu1 %v340_v16 }
  0xc4   : > { %1762 = vmatprep.mubr.msk.f32.mxu1 %vm2234_vm0, %v2235_v6 }
  0xc5   : > { %1656 = vmatmul.mubr.f32.gmra.mrb[32].mxu0 %v341_v17 }
  0xc6   : > { %1658 = vmatprep.mubr.msk.f32.mxu0 %vm2234_vm0, %v2235_v6 }
  0xc7   : > { %1763 = vmatmul.mubr.f32.gmra.mrb[32].mxu1 %v341_v17 }
  0xc8   : > { %1765 = vmatprep.mubr.msk.f32.mxu1 %vm2234_vm0, %v2235_v6 }
  0xc9   : > { %1659 = vmatmul.mubr.f32.gmra.mrb[34].mxu0 %v342_v18 }
  0xca   : > { %1661 = vmatprep.mubr.msk.f32.mxu0 %vm2234_vm0, %v2235_v6 }
  0xcb   : > { %1766 = vmatmul.mubr.f32.gmra.mrb[34].mxu1 %v342_v18 }
  0xcc   : > { %1768 = vmatprep.mubr.msk.f32.mxu1 %vm2234_vm0, %v2235_v6 }
  0xcd   : > { %1662 = vmatmul.mubr.f32.gmra.mrb[36].mxu0 %v343_v19 }
  0xce   : > { %1664 = vmatprep.mubr.msk.f32.mxu0 %vm2234_vm0, %v2235_v6 }
  0xcf   : > { %1769 = vmatmul.mubr.f32.gmra.mrb[36].mxu1 %v343_v19 }
  0xd0   : > { %1771 = vmatprep.mubr.msk.f32.mxu1 %vm2234_vm0, %v2235_v6 }
  0xd1   : > { %1665 = vmatmul.mubr.f32.gmra.mrb[38].mxu0 %v344_v20 }
  0xd2   : > { %1667 = vmatprep.mubr.msk.f32.mxu0 %vm2234_vm0, %v2235_v6 }
  0xd3   : > { %1772 = vmatmul.mubr.f32.gmra.mrb[38].mxu1 %v344_v20 }
  0xd4   : > { %1774 = vmatprep.mubr.msk.f32.mxu1 %vm2234_vm0, %v2235_v6 }
  0xd5   : > { %1668 = vmatmul.mubr.f32.gmra.mrb[40].mxu0 %v345_v21 }
  0xd6   : > { %1670 = vmatprep.mubr.msk.f32.mxu0 %vm2234_vm0, %v2235_v6 }
  0xd7   : > { %1775 = vmatmul.mubr.f32.gmra.mrb[40].mxu1 %v345_v21 }
  0xd8   : > { %1777 = vmatprep.mubr.msk.f32.mxu1 %vm2234_vm0, %v2235_v6 }
  0xd9   : > { %1671 = vmatmul.mubr.f32.gmra.mrb[42].mxu0 %v346_v24 }
  0xda   : > { %1673 = vmatprep.mubr.msk.f32.mxu0 %vm2234_vm0, %v2235_v6 }
  0xdb   : > { %1778 = vmatmul.mubr.f32.gmra.mrb[42].mxu1 %v346_v24 }
  0xdc   : > { %1780 = vmatprep.mubr.msk.f32.mxu1 %vm2234_vm0, %v2235_v6 }
  0xdd   : > { %1674 = vmatmul.mubr.f32.gmra.mrb[44].mxu0 %v347_v26 }
  0xde   : > { %1676 = vmatprep.mubr.msk.f32.mxu0 %vm2234_vm0, %v2235_v6 }
  0xdf   : > { %1781 = vmatmul.mubr.f32.gmra.mrb[44].mxu1 %v347_v26 }
  0xe0   : > { %1783 = vmatprep.mubr.msk.f32.mxu1 %vm2234_vm0, %v2235_v6 }
  0xe1   : > { %1677 = vmatmul.mubr.f32.gmra.mrb[46].mxu0 %v348_v29 }
  0xe2   : > { %1679 = vmatprep.mubr.msk.f32.mxu0 %vm2234_vm0, %v2235_v6 }
  0xe3   : > { %1784 = vmatmul.mubr.f32.gmra.mrb[46].mxu1 %v348_v29 }
  0xe4   : > { %1786 = vmatprep.mubr.msk.f32.mxu1 %vm2234_vm0, %v2235_v6 }
  0xe5   : > { %1680 = vmatmul.mubr.f32.gmra.mrb[48].mxu0 %v349_v31 }
  0xe6   : > { %1821 = vmatprep.mubr.msk.f32.mxu0 %vm2234_vm0, %v2235_v6 }
  0xe7   : > { %1787 = vmatmul.mubr.f32.gmra.mrb[48].mxu1 %v349_v31 }
  0xe8   : > { %1860 = vmatprep.mubr.msk.f32.mxu1 %vm2234_vm0, %v2235_v6 }
 0x158   : > { %v432_v38 = vpop.f32.mrb[0].mxu0 }
 0x159   : > { %v1422_v39 = vmul.f32 -1.442695, %v432_v38  ;;  %v1609_v40 = vpop.f32.mrb[1].mxu0 }
 0x15a   : > { %v638_v41 = vpop.f32.mrb[0].mxu1 }
 0x15b   : > { %2046 = vpow2.f32 %v1422_v39  ;;  %v1716_v43 = vpop.f32.mrb[1].mxu1 }
 0x15c   : > { %v437_v42 = vpop.f32.mrb[2].mxu0 }
 0x15d   : > { %v1423_v44 = vmul.f32 -1.442695, %v437_v42  ;;  %v1612_v45 = vpop.f32.mrb[3].mxu0 }
 0x15e   : > { %v643_v46 = vpop.f32.mrb[2].mxu1 }
 0x15f   : > { %2048 = vpow2.f32 %v1423_v44  ;;  %v1719_v48 = vpop.f32.mrb[3].mxu1 }
 0x160   : > { %v2637_v47 = vpop.f32.mrb[4].mxu0 }
 0x161   : > { %v1424_v3 = vmul.f32 -1.442695, %v2637_v47  ;;  %v1615_v49 = vpop.f32.mrb[5].mxu0 }
 0x162   : > { %v2640_v50 = vpop.f32.mrb[4].mxu1 }
 0x163   : > { %2050 = vpow2.f32 %v1424_v3  ;;  %v1722_v52 = vpop.f32.mrb[5].mxu1 }
 0x164   : > { %v2642_v51 = vpop.f32.mrb[6].mxu0 }
 0x165   : > { %v2047_v53 = vpop.eup %2046  ;;  %v1425_v54 = vmul.f32 -1.442695, %v2642_v51  ;;  %v1618_v55 = vpop.f32.mrb[7].mxu0 }
 0x166   : > { %v837_v56 = vadd.f32 1.0, %v2047_v53  ;;  %v2645_v57 = vpop.f32.mrb[6].mxu1 }
 0x167   : > { %2052 = vpow2.f32 %v1425_v54  ;;  %v1725_v59 = vpop.f32.mrb[7].mxu1 }
 0x168   : > { %2054 = vrcp.f32 %v837_v56  ;;  %v2647_v58 = vpop.f32.mrb[8].mxu0 }
 0x169   : > { %v2049_v60 = vpop.eup %2048  ;;  %v1426_v61 = vmul.f32 -1.442695, %v2647_v58  ;;  %v1621_v62 = vpop.f32.mrb[9].mxu0 }
 0x16a   : > { %v838_v63 = vadd.f32 1.0, %v2049_v60  ;;  %v2650_v0 = vpop.f32.mrb[8].mxu1 }
 0x16b   : > { %2056 = vpow2.f32 %v1426_v61  ;;  %v1728_v2 = vpop.f32.mrb[9].mxu1 }
 0x16c   : > { %2058 = vrcp.f32 %v838_v63  ;;  %v2652_v1 = vpop.f32.mrb[10].mxu0 }
 0x16d   : > { %v2051_v4 = vpop.eup %2050  ;;  %v1427_v5 = vmul.f32 -1.442695, %v2652_v1  ;;  %v1624_v7 = vpop.f32.mrb[11].mxu0 }
 0x16e   : > { %v839_v8 = vadd.f32 1.0, %v2051_v4  ;;  %v2655_v9 = vpop.f32.mrb[10].mxu1 }
 0x16f   : > { %2060 = vpow2.f32 %v1427_v5  ;;  %v1731_v11 = vpop.f32.mrb[11].mxu1 }
 0x170   : > { %2062 = vrcp.f32 %v839_v8  ;;  %v2657_v10 = vpop.f32.mrb[12].mxu0 }
 0x171   : > { %v2053_v12 = vpop.eup %2052  ;;  %v1428_v13 = vmul.f32 -1.442695, %v2657_v10  ;;  %v1627_v14 = vpop.f32.mrb[13].mxu0 }
 0x172   : > { %v2055_v15 = vpop.eup %2054  ;;  %v840_v16 = vadd.f32 1.0, %v2053_v12  ;;  %v2660_v18 = vpop.f32.mrb[12].mxu1 }
 0x173   : > { %v912_v17 = vmul.f32 %v2055_v15, %v432_v38  ;;  %2064 = vpow2.f32 %v1428_v13  ;;  %v1734_v20 = vpop.f32.mrb[13].mxu1 }
 0x174   : > { %2066 = vrcp.f32 %v840_v16  ;;  %v2662_v19 = vpop.f32.mrb[14].mxu0 }
 0x175   : > { %v2057_v21 = vpop.eup %2056  ;;  %v937_v22 = vmul.f32 %v912_v17, %v638_v41  ;;  %v1429_v23 = vmul.f32 -1.442695, %v2662_v19  ;;  %v1630_v24 = vpop.f32.mrb[15].mxu0 }
 0x176   : > { %v2059_v25 = vpop.eup %2058  ;;  %v841_v26 = vadd.f32 1.0, %v2057_v21  ;;  %v2665_v28 = vpop.f32.mrb[14].mxu1 }
 0x177   : > { %v913_v27 = vmul.f32 %v2059_v25, %v437_v42  ;;  %2068 = vpow2.f32 %v1429_v23  ;;  %1822 = vmatmul.mubr.f32.vlgmr.msra.gmra.mrb[50].mxu0 %v937_v22  ;;  %v1737_v30 = vpop.f32.mrb[15].mxu1 }
 0x178   : > { %2070 = vrcp.f32 %v841_v26  ;;  %v2667_v29 = vpop.f32.mrb[16].mxu0  ;;  %1824 = vmatprep.mubr.msk.f32.mxu0 %vm2234_vm0, %v2235_v6 }
 0x179   : > { %v2061_v31 = vpop.eup %2060  ;;  %v938_v32 = vmul.f32 %v913_v27, %v643_v46  ;;  %v1430_v33 = vmul.f32 -1.442695, %v2667_v29  ;;  %v1633_v34 = vpop.f32.mrb[17].mxu0 }
 0x17a   : > { %v2063_v35 = vpop.eup %2062  ;;  %v842_v36 = vadd.f32 1.0, %v2061_v31  ;;  %v2673_v38 = vpop.f32.mrb[16].mxu1 }
 0x17b   : > { %v914_v37 = vmul.f32 %v2063_v35, %v2637_v47  ;;  %2072 = vpow2.f32 %v1430_v33  ;;  %1825 = vmatmul.mubr.f32.gmra.mrb[52].mxu0 %v938_v32  ;;  %v1740_v40 = vpop.f32.mrb[17].mxu1 }
 0x17c   : > { %2074 = vrcp.f32 %v842_v36  ;;  %v2675_v39 = vpop.f32.mrb[18].mxu0  ;;  %1827 = vmatprep.mubr.msk.f32.mxu0 %vm2234_vm0, %v2235_v6 }
 0x17d   : > { %v2065_v41 = vpop.eup %2064  ;;  %v939_v42 = vmul.f32 %v914_v37, %v2640_v50  ;;  %v1431_v43 = vmul.f32 -1.442695, %v2675_v39  ;;  %v1636_v44 = vpop.f32.mrb[19].mxu0 }
 0x17e   : > { %v2067_v45 = vpop.eup %2066  ;;  %v843_v46 = vadd.f32 1.0, %v2065_v41  ;;  %v2682_v48 = vpop.f32.mrb[18].mxu1 }
 0x17f   : > { %v915_v47 = vmul.f32 %v2067_v45, %v2642_v51  ;;  %2076 = vpow2.f32 %v1431_v43  ;;  %1828 = vmatmul.mubr.f32.gmra.mrb[54].mxu0 %v939_v42  ;;  %v1743_v49 = vpop.f32.mrb[19].mxu1 }
 0x180   : > { %2078 = vrcp.f32 %v843_v46  ;;  %v2684_v3 = vpop.f32.mrb[20].mxu0  ;;  %1830 = vmatprep.mubr.msk.f32.mxu0 %vm2234_vm0, %v2235_v6 }
 0x181   : > { %v2069_v52 = vpop.eup %2068  ;;  %v940_v50 = vmul.f32 %v915_v47, %v2645_v57  ;;  %v1432_v53 = vmul.f32 -1.442695, %v2684_v3  ;;  %v1639_v54 = vpop.f32.mrb[21].mxu0 }
 0x182   : > { %v2071_v55 = vpop.eup %2070  ;;  %v844_v56 = vadd.f32 1.0, %v2069_v52  ;;  %v2691_v59 = vpop.f32.mrb[20].mxu1 }
 0x183   : > { %v916_v51 = vmul.f32 %v2071_v55, %v2647_v58  ;;  %2080 = vpow2.f32 %v1432_v53  ;;  %1831 = vmatmul.mubr.f32.gmra.mrb[56].mxu0 %v940_v50  ;;  %v1746_v61 = vpop.f32.mrb[21].mxu1 }
 0x184   : > { %2082 = vrcp.f32 %v844_v56  ;;  %v2693_v60 = vpop.f32.mrb[22].mxu0  ;;  %1833 = vmatprep.mubr.msk.f32.mxu0 %vm2234_vm0, %v2235_v6 }
 0x185   : > { %v2073_v62 = vpop.eup %2072  ;;  %v941_v57 = vmul.f32 %v916_v51, %v2650_v0  ;;  %v1433_v63 = vmul.f32 -1.442695, %v2693_v60  ;;  %v1642_v2 = vpop.f32.mrb[23].mxu0 }
 0x186   : > { %v2075_v4 = vpop.eup %2074  ;;  %v845_v5 = vadd.f32 1.0, %v2073_v62  ;;  %v2700_v7 = vpop.f32.mrb[22].mxu1 }
 0x187   : > { %v917_v58 = vmul.f32 %v2075_v4, %v2652_v1  ;;  %2084 = vpow2.f32 %v1433_v63  ;;  %1834 = vmatmul.mubr.f32.gmra.mrb[58].mxu0 %v941_v57  ;;  %v1749_v11 = vpop.f32.mrb[23].mxu1 }
 0x188   : > { %2086 = vrcp.f32 %v845_v5  ;;  %v2702_v8 = vpop.f32.mrb[24].mxu0  ;;  %1836 = vmatprep.mubr.msk.f32.mxu0 %vm2234_vm0, %v2235_v6 }
 0x189   : > { %v2077_v12 = vpop.eup %2076  ;;  %v942_v0 = vmul.f32 %v917_v58, %v2655_v9  ;;  %v1434_v13 = vmul.f32 -1.442695, %v2702_v8  ;;  %v1645_v14 = vpop.f32.mrb[25].mxu0 }
 0x18a   : > { %v2079_v15 = vpop.eup %2078  ;;  %v846_v16 = vadd.f32 1.0, %v2077_v12  ;;  %v2709_v17 = vpop.f32.mrb[24].mxu1 }
 0x18b   : > { %v918_v1 = vmul.f32 %v2079_v15, %v2657_v10  ;;  %2088 = vpow2.f32 %v1434_v13  ;;  %1837 = vmatmul.mubr.f32.gmra.mrb[60].mxu0 %v942_v0  ;;  %v1752_v21 = vpop.f32.mrb[25].mxu1 }
 0x18c   : > { %2090 = vrcp.f32 %v846_v16  ;;  %v2711_v20 = vpop.f32.mrb[26].mxu0  ;;  %1839 = vmatprep.mubr.msk.f32.mxu0 %vm2234_vm0, %v2235_v6 }
 0x18d   : > { %v2081_v22 = vpop.eup %2080  ;;  %v943_v9 = vmul.f32 %v918_v1, %v2660_v18  ;;  %v1435_v23 = vmul.f32 -1.442695, %v2711_v20  ;;  %v1648_v24 = vpop.f32.mrb[27].mxu0 }
 0x18e   : > { %v2083_v25 = vpop.eup %2082  ;;  %v847_v26 = vadd.f32 1.0, %v2081_v22  ;;  %v2718_v27 = vpop.f32.mrb[26].mxu1 }
 0x18f   : > { %v919_v10 = vmul.f32 %v2083_v25, %v2662_v19  ;;  %2092 = vpow2.f32 %v1435_v23  ;;  %1840 = vmatmul.mubr.f32.gmra.mrb[62].mxu0 %v943_v9  ;;  %v1755_v31 = vpop.f32.mrb[27].mxu1 }
 0x190   : > { %2094 = vrcp.f32 %v847_v26  ;;  %v2720_v30 = vpop.f32.mrb[28].mxu0  ;;  %1842 = vmatprep.mubr.msk.f32.mxu0 %vm2234_vm0, %v2235_v6 }
 0x191   : > { %v2085_v32 = vpop.eup %2084  ;;  %v944_v18 = vmul.f32 %v919_v10, %v2665_v28  ;;  %v1436_v33 = vmul.f32 -1.442695, %v2720_v30  ;;  %v1651_v34 = vpop.f32.mrb[29].mxu0 }
 0x192   : > { %v2087_v35 = vpop.eup %2086  ;;  %v848_v36 = vadd.f32 1.0, %v2085_v32  ;;  %v2727_v37 = vpop.f32.mrb[28].mxu1 }
 0x193   : > { %v920_v19 = vmul.f32 %v2087_v35, %v2667_v29  ;;  %2096 = vpow2.f32 %v1436_v33  ;;  %1843 = vmatmul.mubr.f32.gmra.mrb[64].mxu0 %v944_v18  ;;  %v1758_v41 = vpop.f32.mrb[29].mxu1 }
 0x194   : > { %2098 = vrcp.f32 %v848_v36  ;;  %v2729_v40 = vpop.f32.mrb[30].mxu0  ;;  %1845 = vmatprep.mubr.msk.f32.mxu0 %vm2234_vm0, %v2235_v6 }
 0x195   : > { %v2089_v42 = vpop.eup %2088  ;;  %v945_v28 = vmul.f32 %v920_v19, %v2673_v38  ;;  %v1437_v43 = vmul.f32 -1.442695, %v2729_v40  ;;  %v1654_v44 = vpop.f32.mrb[31].mxu0 }
 0x196   : > { %v2091_v45 = vpop.eup %2090  ;;  %v849_v46 = vadd.f32 1.0, %v2089_v42  ;;  %v2736_v47 = vpop.f32.mrb[30].mxu1 }
 0x197   : > { %v921_v29 = vmul.f32 %v2091_v45, %v2675_v39  ;;  %2100 = vpow2.f32 %v1437_v43  ;;  %1846 = vmatmul.mubr.f32.gmra.mrb[66].mxu0 %v945_v28  ;;  %v1761_v52 = vpop.f32.mrb[31].mxu1 }
 0x198   : > { %2102 = vrcp.f32 %v849_v46  ;;  %v2738_v49 = vpop.f32.mrb[32].mxu0  ;;  %1848 = vmatprep.mubr.msk.f32.mxu0 %vm2234_vm0, %v2235_v6 }
 0x199   : > { %v2093_v50 = vpop.eup %2092  ;;  %v946_v38 = vmul.f32 %v921_v29, %v2682_v48  ;;  %v1438_v53 = vmul.f32 -1.442695, %v2738_v49  ;;  %v1657_v54 = vpop.f32.mrb[33].mxu0 }
 0x19a   : > { %v2095_v55 = vpop.eup %2094  ;;  %v850_v56 = vadd.f32 1.0, %v2093_v50  ;;  %v2745_v51 = vpop.f32.mrb[32].mxu1 }
 0x19b   : > { %v922_v39 = vmul.f32 %v2095_v55, %v2684_v3  ;;  %2104 = vpow2.f32 %v1438_v53  ;;  %1849 = vmatmul.mubr.f32.gmra.mrb[68].mxu0 %v946_v38  ;;  %v1764_v62 = vpop.f32.mrb[33].mxu1 }
 0x19c   : > { %2106 = vrcp.f32 %v850_v56  ;;  %v2747_v61 = vpop.f32.mrb[34].mxu0  ;;  %1851 = vmatprep.mubr.msk.f32.mxu0 %vm2234_vm0, %v2235_v6 }
 0x19d   : > { %v2097_v57 = vpop.eup %2096  ;;  %v947_v48 = vmul.f32 %v922_v39, %v2691_v59  ;;  %v1439_v63 = vmul.f32 -1.442695, %v2747_v61  ;;  %v1660_v2 = vpop.f32.mrb[35].mxu0 }
 0x19e   : > { %v2099_v4 = vpop.eup %2098  ;;  %v851_v5 = vadd.f32 1.0, %v2097_v57  ;;  %v2754_v58 = vpop.f32.mrb[34].mxu1 }
 0x19f   : > { %v923_v3 = vmul.f32 %v2099_v4, %v2693_v60  ;;  %2108 = vpow2.f32 %v1439_v63  ;;  %1852 = vmatmul.mubr.f32.gmra.mrb[70].mxu0 %v947_v48  ;;  %v1767_v12 = vpop.f32.mrb[35].mxu1 }
 0x1a0   : > { %2110 = vrcp.f32 %v851_v5  ;;  %v2756_v11 = vpop.f32.mrb[36].mxu0  ;;  %1854 = vmatprep.mubr.msk.f32.mxu0 %vm2234_vm0, %v2235_v6 }
 0x1a1   : > { %v2101_v0 = vpop.eup %2100  ;;  %v948_v59 = vmul.f32 %v923_v3, %v2700_v7  ;;  %v1440_v13 = vmul.f32 -1.442695, %v2756_v11  ;;  %v1663_v14 = vpop.f32.mrb[37].mxu0 }
 0x1a2   : > { %v2103_v15 = vpop.eup %2102  ;;  %v852_v16 = vadd.f32 1.0, %v2101_v0  ;;  %v2763_v1 = vpop.f32.mrb[36].mxu1 }
 0x1a3   : > { %v924_v60 = vmul.f32 %v2103_v15, %v2702_v8  ;;  %2112 = vpow2.f32 %v1440_v13  ;;  %1855 = vmatmul.mubr.f32.gmra.mrb[72].mxu0 %v948_v59  ;;  %v1770_v22 = vpop.f32.mrb[37].mxu1 }
 0x1a4   : > { %2114 = vrcp.f32 %v852_v16  ;;  %v2765_v21 = vpop.f32.mrb[38].mxu0  ;;  %1857 = vmatprep.mubr.msk.f32.mxu0 %vm2234_vm0, %v2235_v6 }
 0x1a5   : > { %v2105_v9 = vpop.eup %2104  ;;  %v949_v7 = vmul.f32 %v924_v60, %v2709_v17  ;;  %v1441_v23 = vmul.f32 -1.442695, %v2765_v21  ;;  %v1666_v24 = vpop.f32.mrb[39].mxu0 }
 0x1a6   : > { %v2107_v25 = vpop.eup %2106  ;;  %v853_v26 = vadd.f32 1.0, %v2105_v9  ;;  %v2772_v10 = vpop.f32.mrb[38].mxu1 }
 0x1a7   : > { %v925_v8 = vmul.f32 %v2107_v25, %v2711_v20  ;;  %2116 = vpow2.f32 %v1441_v23  ;;  %1858 = vmatmul.mubr.f32.gmra.mrb[74].mxu0 %v949_v7  ;;  %v1773_v32 = vpop.f32.mrb[39].mxu1 }
 0x1a8   : > { %2118 = vrcp.f32 %v853_v26  ;;  %v2774_v31 = vpop.f32.mrb[40].mxu0 }
 0x1a9   : > { %v2109_v18 = vpop.eup %2108  ;;  %v950_v33 = vmul.f32 %v925_v8, %v2718_v27  ;;  %v1442_v17 = vmul.f32 -1.442695, %v2774_v31  ;;  %v1669_v34 = vpop.f32.mrb[41].mxu0 }
 0x1aa   : > { %v2111_v35 = vpop.eup %2110  ;;  %v854_v36 = vadd.f32 1.0, %v2109_v18  ;;  %v2779_v20 = vpop.f32.mrb[40].mxu1 }
 0x1ab   : > { %v926_v19 = vmul.f32 %v2111_v35, %v2720_v30  ;;  %2120 = vpow2.f32 %v1442_v17  ;;  %1861 = vmatmul.mubr.f32.vlgmr.msra.gmra.mrb[50].mxu1 %v950_v33  ;;  %v1776_v42 = vpop.f32.mrb[41].mxu1 }
 0x1ac   : > { %2122 = vrcp.f32 %v854_v36  ;;  %v2781_v41 = vpop.f32.mrb[42].mxu0  ;;  %1863 = vmatprep.mubr.msk.f32.mxu1 %vm2234_vm0, %v2235_v6 }
 0x1ad   : > { %v2113_v28 = vpop.eup %2112  ;;  %v951_v27 = vmul.f32 %v926_v19, %v2727_v37  ;;  %v1443_v43 = vmul.f32 -1.442695, %v2781_v41  ;;  %v1672_v44 = vpop.f32.mrb[43].mxu0 }
 0x1ae   : > { %v2115_v45 = vpop.eup %2114  ;;  %v855_v46 = vadd.f32 1.0, %v2113_v28  ;;  %v2788_v29 = vpop.f32.mrb[42].mxu1 }
 0x1af   : > { %v927_v30 = vmul.f32 %v2115_v45, %v2729_v40  ;;  %2124 = vpow2.f32 %v1443_v43  ;;  %1864 = vmatmul.mubr.f32.gmra.mrb[52].mxu1 %v951_v27  ;;  %v1779_v50 = vpop.f32.mrb[43].mxu1  ;;  %v962_v27 = vld [vmem:[#allocation2] sm:$0xff] }
 0x1b0   : > { %2126 = vrcp.f32 %v855_v46  ;;  %v2790_v52 = vpop.f32.mrb[44].mxu0  ;;  %1866 = vmatprep.mubr.msk.f32.mxu1 %vm2234_vm0, %v2235_v6  ;;  %v963_v46 = vld [vmem:[#allocation2 + $0x8] sm:$0xff]  ;;  %v964_v50 = vld [vmem:[#allocation2 + $0x10] sm:$0xff] }
 0x1b1   : > { %v2117_v38 = vpop.eup %2116  ;;  %v952_v37 = vmul.f32 %v927_v30, %v2736_v47  ;;  %v1444_v53 = vmul.f32 -1.442695, %v2790_v52  ;;  %v1675_v54 = vpop.f32.mrb[45].mxu0 }
 0x1b2   : > { %v2119_v55 = vpop.eup %2118  ;;  %v856_v56 = vadd.f32 1.0, %v2117_v38  ;;  %v748_v39 = vpop.f32.mrb[44].mxu1  ;;  %v965_v54 = vld [vmem:[#allocation2 + $0x18] sm:$0xff] }
 0x1b3   : > { %v928_v40 = vmul.f32 %v2119_v55, %v2738_v49  ;;  %2128 = vpow2.f32 %v1444_v53  ;;  %1867 = vmatmul.mubr.f32.gmra.mrb[54].mxu1 %v952_v37  ;;  %v1782_v57 = vpop.f32.mrb[45].mxu1 }
 0x1b4   : > { %2130 = vrcp.f32 %v856_v56  ;;  %v547_v62 = vpop.f32.mrb[46].mxu0  ;;  %1869 = vmatprep.mubr.msk.f32.mxu1 %vm2234_vm0, %v2235_v6 }
 0x1b5   : > { %v2121_v48 = vpop.eup %2120  ;;  %v953_v63 = vmul.f32 %v928_v40, %v2745_v51  ;;  %v1445_v47 = vmul.f32 -1.442695, %v547_v62  ;;  %v1678_v2 = vpop.f32.mrb[47].mxu0  ;;  %v966_v40 = vld [vmem:[#allocation2 + $0x20] sm:$0xff] }
 0x1b6   : > { %v2123_v4 = vpop.eup %2122  ;;  %v857_v5 = vadd.f32 1.0, %v2121_v48  ;;  %v753_v49 = vpop.f32.mrb[46].mxu1  ;;  %v967_v48 = vld [vmem:[#allocation2 + $0x28] sm:$0xff] }
 0x1b7   : > { %v929_v3 = vmul.f32 %v2123_v4, %v2747_v61  ;;  %2132 = vpow2.f32 %v1445_v47  ;;  %1870 = vmatmul.mubr.f32.gmra.mrb[56].mxu1 %v953_v63  ;;  %v1785_v0 = vpop.f32.mrb[47].mxu1  ;;  %v968_v4 = vld [vmem:[#allocation2 + $0x30] sm:$0xff] }
 0x1b8   : > { %2134 = vrcp.f32 %v857_v5  ;;  %v552_v12 = vpop.f32.mrb[48].mxu0  ;;  %1872 = vmatprep.mubr.msk.f32.mxu1 %vm2234_vm0, %v2235_v6 }
 0x1b9   : > { %v2125_v59 = vpop.eup %2124  ;;  %v954_v13 = vmul.f32 %v929_v3, %v2754_v58  ;;  %v1446_v14 = vmul.f32 -1.442695, %v552_v12  ;;  %v1681_v51 = vpop.f32.mrb[49].mxu0 }
 0x1ba   : > { %v2127_v15 = vpop.eup %2126  ;;  %v858_v16 = vadd.f32 1.0, %v2125_v59  ;;  %v758_v61 = vpop.f32.mrb[48].mxu1 }
 0x1bb   : > { %v930_v60 = vmul.f32 %v2127_v15, %v2756_v11  ;;  %2136 = vpow2.f32 %v1446_v14  ;;  %1873 = vmatmul.mubr.f32.gmra.mrb[58].mxu1 %v954_v13  ;;  %v1788_v22 = vpop.f32.mrb[49].mxu1  ;;  %v970_v14 = vld [vmem:[#allocation2 + $0x40] sm:$0xff] }
 0x1bc   : > { %2138 = vrcp.f32 %v858_v16  ;;  %1875 = vmatprep.mubr.msk.f32.mxu1 %vm2234_vm0, %v2235_v6 }
 0x1bd   : > { %v2129_v9 = vpop.eup %2128  ;;  %v955_v7 = vmul.f32 %v930_v60, %v2763_v1  ;;  %v971_v60 = vld [vmem:[#allocation2 + $0x48] sm:$0xff] }
 0x1be   : > { %v2131_v23 = vpop.eup %2130  ;;  %v859_v24 = vadd.f32 1.0, %v2129_v9 }
 0x1bf   : > { %v931_v58 = vmul.f32 %v2131_v23, %v2765_v21  ;;  %1876 = vmatmul.mubr.f32.gmra.mrb[60].mxu1 %v955_v7  ;;  %v972_v7 = vld [vmem:[#allocation2 + $0x50] sm:$0xff] }
 0x1c0   : > { %2140 = vrcp.f32 %v859_v24  ;;  %1878 = vmatprep.mubr.msk.f32.mxu1 %vm2234_vm0, %v2235_v6 }
 0x1c1   : > { %v2133_v11 = vpop.eup %2132  ;;  %v956_v25 = vmul.f32 %v931_v58, %v2772_v10 }
 0x1c2   : > { %v2135_v26 = vpop.eup %2134  ;;  %v860_v8 = vadd.f32 1.0, %v2133_v11  ;;  %v973_v11 = vld [vmem:[#allocation2 + $0x58] sm:$0xff] }
 0x1c3   : > { %v932_v32 = vmul.f32 %v2135_v26, %v2774_v31  ;;  %1879 = vmatmul.mubr.f32.gmra.mrb[62].mxu1 %v956_v25 }
 0x1c4   : > { %2142 = vrcp.f32 %v860_v8  ;;  %1881 = vmatprep.mubr.msk.f32.mxu1 %vm2234_vm0, %v2235_v6 }
 0x1c5   : > { %v2137_v1 = vpop.eup %2136  ;;  %v957_v21 = vmul.f32 %v932_v32, %v2779_v20  ;;  %v974_v32 = vld [vmem:[#allocation2 + $0x60] sm:$0xff] }
 0x1c6   : > { %v2139_v18 = vpop.eup %2138  ;;  %v861_v33 = vadd.f32 1.0, %v2137_v1 }
 0x1c7   : > { %v933_v17 = vmul.f32 %v2139_v18, %v2781_v41  ;;  %1882 = vmatmul.mubr.f32.gmra.mrb[64].mxu1 %v957_v21 }
 0x1c8   : > { %2144 = vrcp.f32 %v861_v33  ;;  %1884 = vmatprep.mubr.msk.f32.mxu1 %vm2234_vm0, %v2235_v6  ;;  %v975_v33 = vld [vmem:[#allocation2 + $0x68] sm:$0xff] }
 0x1c9   : > { %v958_v10 = vmul.f32 %v933_v17, %v2788_v29 }
 0x1ca   : > { %v2141_v31 = vpop.eup %2140 }
 0x1cb   : > { %v934_v34 = vmul.f32 %v2141_v31, %v2790_v52  ;;  %1885 = vmatmul.mubr.f32.gmra.mrb[66].mxu1 %v958_v10 }
 0x1cc   : > { %1887 = vmatprep.mubr.msk.f32.mxu1 %vm2234_vm0, %v2235_v6 }
 0x1cd   : > { %v959_v35 = vmul.f32 %v934_v34, %v748_v39  ;;  %v976_v34 = vld [vmem:[#allocation2 + $0x70] sm:$0xff] }
 0x1ce   : > { %v2143_v36 = vpop.eup %2142 }
 0x1cf   : > { %v935_v19 = vmul.f32 %v2143_v36, %v547_v62  ;;  %1888 = vmatmul.mubr.f32.gmra.mrb[68].mxu1 %v959_v35 }
 0x1d0   : > { %1890 = vmatprep.mubr.msk.f32.mxu1 %vm2234_vm0, %v2235_v6 }
 0x1d1   : > { %v960_v20 = vmul.f32 %v935_v19, %v753_v49 }
 0x1d2   : > { %v2145_v41 = vpop.eup %2144 }
 0x1d3   : > { %v936_v42 = vmul.f32 %v2145_v41, %v552_v12  ;;  %1891 = vmatmul.mubr.f32.gmra.mrb[70].mxu1 %v960_v20  ;;  %v969_v12 = vld [vmem:[#allocation2 + $0x38] sm:$0xff] }
 0x1d4   : > { %1893 = vmatprep.mubr.msk.f32.mxu1 %vm2234_vm0, %v2235_v6  ;;  %v977_v20 = vld [vmem:[#allocation2 + $0x78] sm:$0xff] }
 0x1d5   : > { %v961_v28 = vmul.f32 %v936_v42, %v758_v61 }
 0x1d7   : > { %1894 = vmatmul.mubr.f32.gmra.mrb[72].mxu1 %v961_v28 }
 0x24a   : > { %v1069_v43 = vpop.f32.mrb[50].mxu0 }
 0x24b   : > { %v1193_v44 = vadd.f32 %v1069_v43, %v962_v27  ;;  %v1823_v45 = vpop.f32.mrb[51].mxu0  ;;  %v978_v27 = vld [vmem:[#allocation2 + $0x80] sm:$0xff] }
 0x24d   : > { %1218 = vst [vmem:[#allocation2] sm:$0xff] %v1193_v44 }
 0x24e   : > { %v1074_v30 = vpop.f32.mrb[52].mxu0 }
 0x24f   : > { %v1194_v29 = vadd.f32 %v1074_v30, %v963_v46  ;;  %v1826_v52 = vpop.f32.mrb[53].mxu0  ;;  %v979_v46 = vld [vmem:[#allocation2 + $0x88] sm:$0xff] }
 0x251   : > { %1219 = vst [vmem:[#allocation2 + $0x8] sm:$0xff] %v1194_v29 }
 0x252   : > { %v1079_v38 = vpop.f32.mrb[54].mxu0 }
 0x253   : > { %v1195_v37 = vadd.f32 %v1079_v38, %v964_v50  ;;  %v1829_v53 = vpop.f32.mrb[55].mxu0  ;;  %v980_v50 = vld [vmem:[#allocation2 + $0x90] sm:$0xff] }
 0x255   : > { %1220 = vst [vmem:[#allocation2 + $0x10] sm:$0xff] %v1195_v37 }
 0x256   : > { %v1084_v55 = vpop.f32.mrb[56].mxu0 }
 0x257   : > { %v1196_v6 = vadd.f32 %v1084_v55, %v965_v54  ;;  %v1832_v56 = vpop.f32.mrb[57].mxu0  ;;  %v981_v54 = vld [vmem:[#allocation2 + $0x98] sm:$0xff] }
 0x259   : > { %1221 = vst [vmem:[#allocation2 + $0x18] sm:$0xff] %v1196_v6 }
 0x25a   : > { %v1089_v39 = vpop.f32.mrb[58].mxu0 }
 0x25b   : > { %v1197_v62 = vadd.f32 %v1089_v39, %v966_v40  ;;  %v1835_v57 = vpop.f32.mrb[59].mxu0  ;;  %v982_v40 = vld [vmem:[#allocation2 + $0xa0] sm:$0xff] }
 0x25d   : > { %1222 = vst [vmem:[#allocation2 + $0x20] sm:$0xff] %v1197_v62 }
 0x25e   : > { %v1094_v63 = vpop.f32.mrb[60].mxu0 }
 0x25f   : > { %v1198_v47 = vadd.f32 %v1094_v63, %v967_v48  ;;  %v1838_v2 = vpop.f32.mrb[61].mxu0  ;;  %v983_v48 = vld [vmem:[#allocation2 + $0xa8] sm:$0xff] }
 0x261   : > { %1223 = vst [vmem:[#allocation2 + $0x28] sm:$0xff] %v1198_v47 }
 0x262   : > { %v1099_v5 = vpop.f32.mrb[62].mxu0 }
 0x263   : > { %v1199_v3 = vadd.f32 %v1099_v5, %v968_v4  ;;  %v1841_v49 = vpop.f32.mrb[63].mxu0  ;;  %v984_v4 = vld [vmem:[#allocation2 + $0xb0] sm:$0xff] }
 0x265   : > { %1224 = vst [vmem:[#allocation2 + $0x30] sm:$0xff] %v1199_v3 }
 0x266   : > { %v1104_v0 = vpop.f32.mrb[64].mxu0 }
 0x267   : > { %v1200_v59 = vadd.f32 %v1104_v0, %v969_v12  ;;  %v1844_v13 = vpop.f32.mrb[65].mxu0  ;;  %v985_v12 = vld [vmem:[#allocation2 + $0xb8] sm:$0xff] }
 0x269   : > { %1225 = vst [vmem:[#allocation2 + $0x38] sm:$0xff] %v1200_v59 }
 0x26a   : > { %v1109_v51 = vpop.f32.mrb[66].mxu0 }
 0x26b   : > { %v1201_v15 = vadd.f32 %v1109_v51, %v970_v14  ;;  %v1847_v16 = vpop.f32.mrb[67].mxu0  ;;  %v986_v14 = vld [vmem:[#allocation2 + $0xc0] sm:$0xff] }
 0x26d   : > { %1226 = vst [vmem:[#allocation2 + $0x40] sm:$0xff] %v1201_v15 }
 0x26e   : > { %v1114_v61 = vpop.f32.mrb[68].mxu0 }
 0x26f   : > { %v1202_v22 = vadd.f32 %v1114_v61, %v971_v60  ;;  %v1850_v9 = vpop.f32.mrb[69].mxu0  ;;  %v1247_v60 = vld [vmem:[#allocation2] sm:$0xff] (!%p1447_p7)  ;;  %v1248_v61 = vld [vmem:[#allocation2 + $0x8] sm:$0xff] (!%p1447_p7) }
 0x270   : > { %1272 = vst [vmem:[%s2925_s4] sm:$0xff] (!%p1447_p7), %v1247_v60  ;;  %1273 = vst [vmem:[%s2925_s4 + $0x8] sm:$0xff] (!%p1447_p7), %v1248_v61  ;;  %v1250_v9 = vld [vmem:[#allocation2 + $0x18] sm:$0xff] (!%p1447_p7) }
 0x271   : > { %1227 = vst [vmem:[#allocation2 + $0x48] sm:$0xff] %v1202_v22  ;;  %v1249_v22 = vld [vmem:[#allocation2 + $0x10] sm:$0xff] (!%p1447_p7)  ;;  %1275 = vst [vmem:[%s2925_s4 + $0x18] sm:$0xff] (!%p1447_p7), %v1250_v9 }
 0x272   : > { %v1119_v23 = vpop.f32.mrb[70].mxu0  ;;  %1274 = vst [vmem:[%s2925_s4 + $0x10] sm:$0xff] (!%p1447_p7), %v1249_v22 }
 0x273   : > { %v1203_v24 = vadd.f32 %v1119_v23, %v972_v7  ;;  %v1853_v58 = vpop.f32.mrb[71].mxu0  ;;  %v1251_v7 = vld [vmem:[#allocation2 + $0x20] sm:$0xff] (!%p1447_p7)  ;;  %v1252_v23 = vld [vmem:[#allocation2 + $0x28] sm:$0xff] (!%p1447_p7) }
 0x274   : > { %1276 = vst [vmem:[%s2925_s4 + $0x20] sm:$0xff] (!%p1447_p7), %v1251_v7  ;;  %1277 = vst [vmem:[%s2925_s4 + $0x28] sm:$0xff] (!%p1447_p7), %v1252_v23  ;;  %v1254_v58 = vld [vmem:[#allocation2 + $0x38] sm:$0xff] (!%p1447_p7) }
 0x275   : > { %1228 = vst [vmem:[#allocation2 + $0x50] sm:$0xff] %v1203_v24  ;;  %v1253_v24 = vld [vmem:[#allocation2 + $0x30] sm:$0xff] (!%p1447_p7)  ;;  %1279 = vst [vmem:[%s2925_s4 + $0x38] sm:$0xff] (!%p1447_p7), %v1254_v58 }
 0x276   : > { %v1124_v25 = vpop.f32.mrb[72].mxu0  ;;  %1278 = vst [vmem:[%s2925_s4 + $0x30] sm:$0xff] (!%p1447_p7), %v1253_v24 }
 0x277   : > { %v1204_v26 = vadd.f32 %v1124_v25, %v973_v11  ;;  %v1856_v8 = vpop.f32.mrb[73].mxu0  ;;  %v1255_v11 = vld [vmem:[#allocation2 + $0x40] sm:$0xff] (!%p1447_p7) }
 0x278   : > { %1280 = vst [vmem:[%s2925_s4 + $0x40] sm:$0xff] (!%p1447_p7), %v1255_v11  ;;  %v1256_v25 = vld [vmem:[#allocation2 + $0x48] sm:$0xff] (!%p1447_p7) }
 0x279   : > { %1229 = vst [vmem:[#allocation2 + $0x58] sm:$0xff] %v1204_v26  ;;  %1281 = vst [vmem:[%s2925_s4 + $0x48] sm:$0xff] (!%p1447_p7), %v1256_v25 }
 0x27a   : > { %v1129_v1 = vpop.f32.mrb[74].mxu0 }
 0x27b   : > { %v1205_v21 = vadd.f32 %v1129_v1, %v974_v32  ;;  %v1859_v18 = vpop.f32.mrb[75].mxu0 }
 0x27c   : > { %v1257_v26 = vld [vmem:[#allocation2 + $0x50] sm:$0xff] (!%p1447_p7) }
 0x27d   : > { %1230 = vst [vmem:[#allocation2 + $0x60] sm:$0xff] %v1205_v21  ;;  %1282 = vst [vmem:[%s2925_s4 + $0x50] sm:$0xff] (!%p1447_p7), %v1257_v26 }
 0x27e   : > { %v1134_v17 = vpop.f32.mrb[50].mxu1 }
 0x27f   : > { %v1206_v10 = vadd.f32 %v1134_v17, %v975_v33  ;;  %v1862_v31 = vpop.f32.mrb[51].mxu1 }
 0x280   : > { %v1258_v8 = vld [vmem:[#allocation2 + $0x58] sm:$0xff] (!%p1447_p7) }
 0x281   : > { %1231 = vst [vmem:[#allocation2 + $0x68] sm:$0xff] %v1206_v10  ;;  %1283 = vst [vmem:[%s2925_s4 + $0x58] sm:$0xff] (!%p1447_p7), %v1258_v8 }
 0x282   : > { %v1139_v35 = vpop.f32.mrb[52].mxu1 }
 0x283   : > { %v1207_v36 = vadd.f32 %v1139_v35, %v976_v34  ;;  %v1865_v19 = vpop.f32.mrb[53].mxu1 }
 0x284   : > { %v1259_v32 = vld [vmem:[#allocation2 + $0x60] sm:$0xff] (!%p1447_p7) }
 0x285   : > { %1232 = vst [vmem:[#allocation2 + $0x70] sm:$0xff] %v1207_v36  ;;  %1284 = vst [vmem:[%s2925_s4 + $0x60] sm:$0xff] (!%p1447_p7), %v1259_v32 }
 0x286   : > { %v1144_v41 = vpop.f32.mrb[54].mxu1 }
 0x287   : > { %v1208_v42 = vadd.f32 %v1144_v41, %v977_v20  ;;  %v1868_v28 = vpop.f32.mrb[55].mxu1 }
 0x288   : > { %v1260_v1 = vld [vmem:[#allocation2 + $0x68] sm:$0xff] (!%p1447_p7) }
 0x289   : > { %1233 = vst [vmem:[#allocation2 + $0x78] sm:$0xff] %v1208_v42  ;;  %1285 = vst [vmem:[%s2925_s4 + $0x68] sm:$0xff] (!%p1447_p7), %v1260_v1 }
 0x28a   : > { %v1149_v43 = vpop.f32.mrb[56].mxu1 }
 0x28b   : > { %v1209_v44 = vadd.f32 %v1149_v43, %v978_v27  ;;  %v1871_v45 = vpop.f32.mrb[57].mxu1 }
 0x28c   : > { %v1261_v21 = vld [vmem:[#allocation2 + $0x70] sm:$0xff] (!%p1447_p7) }
 0x28d   : > { %1234 = vst [vmem:[#allocation2 + $0x80] sm:$0xff] %v1209_v44  ;;  %1286 = vst [vmem:[%s2925_s4 + $0x70] sm:$0xff] (!%p1447_p7), %v1261_v21 }
 0x28e   : > { %v1154_v30 = vpop.f32.mrb[58].mxu1 }
 0x28f   : > { %v1210_v29 = vadd.f32 %v1154_v30, %v979_v46  ;;  %v1874_v52 = vpop.f32.mrb[59].mxu1 }
 0x290   : > { %v1262_v18 = vld [vmem:[#allocation2 + $0x78] sm:$0xff] (!%p1447_p7) }
 0x291   : > { %1235 = vst [vmem:[#allocation2 + $0x88] sm:$0xff] %v1210_v29  ;;  %1287 = vst [vmem:[%s2925_s4 + $0x78] sm:$0xff] (!%p1447_p7), %v1262_v18 }
 0x292   : > { %v1159_v38 = vpop.f32.mrb[60].mxu1 }
 0x293   : > { %v1211_v37 = vadd.f32 %v1159_v38, %v980_v50  ;;  %v1877_v53 = vpop.f32.mrb[61].mxu1 }
 0x294   : > { %v1263_v33 = vld [vmem:[#allocation2 + $0x80] sm:$0xff] (!%p1447_p7) }
 0x295   : > { %1236 = vst [vmem:[#allocation2 + $0x90] sm:$0xff] %v1211_v37  ;;  %1288 = vst [vmem:[%s2925_s4 + $0x80] sm:$0xff] (!%p1447_p7), %v1263_v33 }
 0x296   : > { %v1164_v55 = vpop.f32.mrb[62].mxu1 }
 0x297   : > { %v1212_v6 = vadd.f32 %v1164_v55, %v981_v54  ;;  %v1880_v56 = vpop.f32.mrb[63].mxu1 }
 0x298   : > { %v1264_v17 = vld [vmem:[#allocation2 + $0x88] sm:$0xff] (!%p1447_p7) }
 0x299   : > { %1237 = vst [vmem:[#allocation2 + $0x98] sm:$0xff] %v1212_v6  ;;  %1289 = vst [vmem:[%s2925_s4 + $0x88] sm:$0xff] (!%p1447_p7), %v1264_v17 }
 0x29a   : > { %v1169_v39 = vpop.f32.mrb[64].mxu1 }
 0x29b   : > { %v1213_v62 = vadd.f32 %v1169_v39, %v982_v40  ;;  %v1883_v57 = vpop.f32.mrb[65].mxu1 }
 0x29c   : > { %v1265_v10 = vld [vmem:[#allocation2 + $0x90] sm:$0xff] (!%p1447_p7) }
 0x29d   : > { %1238 = vst [vmem:[#allocation2 + $0xa0] sm:$0xff] %v1213_v62  ;;  %1290 = vst [vmem:[%s2925_s4 + $0x90] sm:$0xff] (!%p1447_p7), %v1265_v10 }
 0x29e   : > { %v1174_v63 = vpop.f32.mrb[66].mxu1 }
 0x29f   : > { %v1214_v47 = vadd.f32 %v1174_v63, %v983_v48  ;;  %v1886_v2 = vpop.f32.mrb[67].mxu1 }
 0x2a0   : > { %v1266_v31 = vld [vmem:[#allocation2 + $0x98] sm:$0xff] (!%p1447_p7) }
 0x2a1   : > { %1239 = vst [vmem:[#allocation2 + $0xa8] sm:$0xff] %v1214_v47  ;;  %1291 = vst [vmem:[%s2925_s4 + $0x98] sm:$0xff] (!%p1447_p7), %v1266_v31 }
 0x2a2   : > { %v1179_v5 = vpop.f32.mrb[68].mxu1 }
 0x2a3   : > { %v1215_v3 = vadd.f32 %v1179_v5, %v984_v4  ;;  %v1889_v49 = vpop.f32.mrb[69].mxu1 }
 0x2a4   : > { %v1267_v34 = vld [vmem:[#allocation2 + $0xa0] sm:$0xff] (!%p1447_p7) }
 0x2a5   : > { %1240 = vst [vmem:[#allocation2 + $0xb0] sm:$0xff] %v1215_v3  ;;  %1292 = vst [vmem:[%s2925_s4 + $0xa0] sm:$0xff] (!%p1447_p7), %v1267_v34 }
 0x2a6   : > { %v1184_v0 = vpop.f32.mrb[70].mxu1 }
 0x2a7   : > { %v1216_v59 = vadd.f32 %v1184_v0, %v985_v12  ;;  %v1892_v13 = vpop.f32.mrb[71].mxu1  ;;  %1246 = sbr.rel (%p1447_p7) target bundleno = 694 (0x2b6), region = 48 }
 0x2a8   : > { %v1268_v35 = vld [vmem:[#allocation2 + $0xa8] sm:$0xff] (!%p1447_p7) }
 0x2a9   : > { %1241 = vst [vmem:[#allocation2 + $0xb8] sm:$0xff] %v1216_v59  ;;  %1293 = vst [vmem:[%s2925_s4 + $0xa8] sm:$0xff] (!%p1447_p7), %v1268_v35 }
 0x2aa   : > { %v1189_v51 = vpop.f32.mrb[72].mxu1 }
 0x2ab   : > { %v1217_v15 = vadd.f32 %v1189_v51, %v986_v14  ;;  %v1895_v16 = vpop.f32.mrb[73].mxu1 }
 0x2ac   : > { %v1269_v36 = vld [vmem:[#allocation2 + $0xb0] sm:$0xff] (!%p1447_p7) }
 0x2ad   : > { %1242 = vst [vmem:[#allocation2 + $0xc0] sm:$0xff] %v1217_v15  ;;  %1294 = vst [vmem:[%s2925_s4 + $0xb0] sm:$0xff] (!%p1447_p7), %v1269_v36 }
 0x2b0   : > { %v1270_v19 = vld [vmem:[#allocation2 + $0xb8] sm:$0xff] }
 0x2b1   : > { %1295 = vst [vmem:[%s2925_s4 + $0xb8] sm:$0xff] %v1270_v19 }
 0x2b4   : > { %v1271_v20 = vld [vmem:[#allocation2 + $0xc0] sm:$0xff] }
 0x2b5   : > { %1296 = vst [vmem:[%s2925_s4 + $0xc0] sm:$0xff] %v1271_v20 }
 0x2b6 PF: > { %s17_s20 = sadd.s32 1, %s2226_s20   ;;  %s2930_s15 = smov %s2210_s16 }
 0x2b7   : > { %p14_p5 = scmp.ge.s32.totalorder %s17_s20, 6   ;;  %s2931_s16 = smov %s2214_s17 }
 0x2b8   : > { %s2932_s17 = smov %s2310_s27  ;;  %s2933_s18 = smov %s2222_s19 }
 0x2b9   : > { %s2934_s19 = smov %s2936_s22  ;;  %16 = sbr.rel (!%p14_p5) target bundleno = 4 (0x4), region = 93 }
 0x2c0   :  { %1319 = vsyncpa [#allocation4], 1 }
 0x2c1   :  { %1321 = vsyncpa [#allocation4 + $0x1], 1 }

</bundles_post_ra>
